<compile_context>
chip_gen: v5e
topology: v5e:2x2
jax: 0.10.0
libtpu: 0.0.40
codegen_flags: <defaults>
</compile_context>

<pallas_src>
import functools

import jax
import jax.numpy as jnp
from jax import lax
from jax.experimental import pallas as pl
from jax.experimental.pallas import tpu as pltpu

_LANE = 128


# ---------------------------------------------------------------------------
# activation epilogues (run in f32 inside the kernel)
# ---------------------------------------------------------------------------
def _mish(y):
    # y * tanh(softplus(y)) with a single exp:
    #   tanh(log1p(e^y)) = e^y*(e^y+2) / (e^y*(e^y+2) + 2)
    # Matches PyTorch softplus(beta=1, threshold=20): for y > 20, softplus == y
    # and tanh(y) == 1.0 in f32, so mish(y) == y.
    e = jnp.exp(jnp.minimum(y, 20.0))
    t = e * (e + 2.0)
    return jnp.where(y > 20.0, y, y * t * pl.reciprocal(t + 2.0, approx=True))


def _activate(y, act):
    if act == "mish":
        return _mish(y)
    if act == "relu":
        return jnp.maximum(y, 0.0)
    if act == "leaky":
        return jnp.where(y > 0.0, y, 0.1 * y)
    if act == "linear":
        return y
    raise ValueError(f"unsupported activation: {act}")


# ---------------------------------------------------------------------------
# fused conv + BN-bias + activation kernel
# ---------------------------------------------------------------------------
def _conv_bn_act_kernel(x_ref, w_ref, b_ref, o_ref, *, k, stride, hout, wout, act):
    """One (image, Cout-tile) grid step.

    x_ref : (Hp, Wp, Cin)     zero-padded input image (bf16, VMEM)
    w_ref : (k*k, Cin, tn)    BN-folded weights, tap-major (bf16, VMEM)
    b_ref : (1, tn)           folded BN / conv bias (f32)
    o_ref : (Hout, Wout, tn)  output tile
    """
    xp = x_ref[...]
    cin = xp.shape[-1]
    tn = o_ref.shape[-1]
    h_span = (hout - 1) * stride + 1
    w_span = (wout - 1) * stride + 1

    acc = jnp.zeros((hout * wout, tn), jnp.float32)
    # k*k shifted-window bf16 matmuls accumulated in f32 — im2col never touches HBM.
    for ky in range(k):
        for kx in range(k):
            win = xp[ky:ky + h_span:stride, kx:kx + w_span:stride, :]
            win = win.reshape(hout * wout, cin)
            acc = acc + jnp.dot(win, w_ref[ky * k + kx],
                                preferred_element_type=jnp.float32)

    y = acc + b_ref[...]
    y = _activate(y, act)
    o_ref[...] = y.reshape(hout, wout, tn).astype(o_ref.dtype)


# ---------------------------------------------------------------------------
# parameter folding (eval-mode BatchNorm -> weight scale + bias)
# ---------------------------------------------------------------------------
def fold_conv_bn_params(w_oihw, conv_bias=None, bn=None):
    """Returns (w_taps, bias) with BN folded in.

    w_taps : (k*k, Cin, Cout) bf16, tap-major, BN scale folded into the weights
    bias   : (Cout,)          f32
    """
    cout, cin, kh, kw = w_oihw.shape
    assert kh == kw, "only square kernels are supported"
    if bn is not None:
        scale = bn["gamma"] / jnp.sqrt(bn["var"] + bn["eps"])
        bias = bn["beta"] - bn["mean"] * scale
        if conv_bias is not None:
            bias = bias + scale * conv_bias
        w_f = w_oihw * scale[:, None, None, None]
    else:
        w_f = w_oihw
        bias = conv_bias if conv_bias is not None else jnp.zeros((cout,), jnp.float32)
    # (Cout, Cin, kH, kW) -> (kH, kW, Cin, Cout) -> (k*k, Cin, Cout)
    w_taps = jnp.transpose(w_f, (2, 3, 1, 0)).reshape(kh * kw, cin, cout)
    return w_taps.astype(jnp.bfloat16), bias.astype(jnp.float32)


# ---------------------------------------------------------------------------
# forward wrapper (PyTorch NCHW in / NCHW out)
# ---------------------------------------------------------------------------
def conv_bn_activate_forward(x_nchw, w_oihw, *, stride=1, activation="mish",
                             conv_bias=None, bn=None, out_dtype=jnp.float32):
    cout, cin, k, _ = w_oihw.shape
    n, c, h, w = x_nchw.shape
    assert c == cin
    pad = (k - 1) // 2
    hout = (h + 2 * pad - k) // stride + 1
    wout = (w + 2 * pad - k) // stride + 1
    hp, wp = h + 2 * pad, w + 2 * pad

    w_taps, bias = fold_conv_bn_params(w_oihw, conv_bias, bn)

    # Pad Cout to a multiple of 128 so every output store is lane-dense.
    cout_p = ((cout + _LANE - 1) // _LANE) * _LANE
    if cout_p != cout:
        w_taps = jnp.pad(w_taps, ((0, 0), (0, 0), (0, cout_p - cout)))
        bias = jnp.pad(bias, (0, cout_p - cout))
    bias2 = bias.reshape(1, cout_p)

    # NCHW -> NHWC, zero-pad spatial, bf16 for the MXU.
    x = jnp.transpose(x_nchw, (0, 2, 3, 1))
    xp = jnp.pad(x, ((0, 0), (pad, pad), (pad, pad), (0, 0))).astype(jnp.bfloat16)

    tn = 256 if (cout_p > _LANE and cout_p % 256 == 0) else _LANE
    grid = (n, cout_p // tn)

    kernel = functools.partial(_conv_bn_act_kernel, k=k, stride=stride,
                               hout=hout, wout=wout, act=activation)

    out = pl.pallas_call(
        kernel,
        out_shape=jax.ShapeDtypeStruct((n, hout, wout, cout_p), out_dtype),
        grid=grid,
        in_specs=[
            pl.BlockSpec((None, hp, wp, cin), lambda i, j: (i, 0, 0, 0)),
            pl.BlockSpec((k * k, cin, tn), lambda i, j: (0, 0, j)),
            pl.BlockSpec((1, tn), lambda i, j: (0, j)),
        ],
        out_specs=pl.BlockSpec((None, hout, wout, tn), lambda i, j: (i, 0, 0, j)),
        compiler_params=pltpu.CompilerParams(
            dimension_semantics=("parallel", "parallel")),
    )(xp, w_taps, bias2)

    out = out[..., :cout]                      # drop lane padding
    return jnp.transpose(out, (0, 3, 1, 2))    # NHWC -> NCHW


# ---------------------------------------------------------------------------
# demo / sanity check
# ---------------------------------------------------------------------------
if __name__ == "__main__":
    key = jax.random.PRNGKey(0)
    in_channels, out_channels, kernel_size, stride = 4, 8, 3, 1
    k_w, k_g, k_b, k_m, k_v, k_x = jax.random.split(key, 6)

    w = jax.random.normal(
        k_w, (out_channels, in_channels, kernel_size, kernel_size), jnp.float32) * 0.1
    bn = {
        "gamma": 1.0 + 0.1 * jax.random.normal(k_g, (out_channels,), jnp.float32),
        "beta": 0.1 * jax.random.normal(k_b, (out_channels,), jnp.float32),
        "mean": 0.1 * jax.random.normal(k_m, (out_channels,), jnp.float32),
        "var": 1.0 + 0.1 * jax.random.uniform(k_v, (out_channels,), jnp.float32),
        "eps": 1e-5,
    }
    x = jax.random.normal(k_x, (2, in_channels, 16, 16), jnp.float32)   # NCHW

    out = conv_bn_activate_forward(x, w, stride=stride, activation="mish", bn=bn)
    out = jax.block_until_ready(out)
    assert out.shape == (2, out_channels, 16, 16), out.shape
    assert bool(jnp.all(jnp.isfinite(out)))

    # plain-JAX f32 reference (conv -> BN eval -> mish); bf16 MXU inputs => loose tol
    pad = (kernel_size - 1) // 2
    x_nhwc = jnp.transpose(x, (0, 2, 3, 1))
    w_hwio = jnp.transpose(w, (2, 3, 1, 0))
    ref = lax.conv_general_dilated(
        x_nhwc, w_hwio, (stride, stride), ((pad, pad), (pad, pad)),
        dimension_numbers=("NHWC", "HWIO", "NHWC"))
    scale = bn["gamma"] / jnp.sqrt(bn["var"] + bn["eps"])
    ref = ref * scale + (bn["beta"] - bn["mean"] * scale)
    ref = ref * jnp.tanh(jax.nn.softplus(ref))
    ref = jnp.transpose(ref, (0, 3, 1, 2))
    err = float(jnp.max(jnp.abs(out - ref)))
    assert err < 1e-1, f"max abs error vs reference too large: {err}"

    print("KERNEL_OK")
</pallas_src>

<mosaic_0001>
module attributes {stable_mosaic.version = 11 : i64} {
  func.func @_conv_bn_act_kernel(%arg0: i32, %arg1: i32, %arg2: memref<1x18x18x4xbf16, #tpu.memory_space<vmem>>, %arg3: memref<9x4x128xbf16, #tpu.memory_space<vmem>>, %arg4: memref<1x128xf32, #tpu.memory_space<vmem>>, %arg5: memref<1x16x16x128xf32, #tpu.memory_space<vmem>>) attributes {dimension_semantics = [#tpu.dimension_semantics<parallel>, #tpu.dimension_semantics<parallel>], iteration_bounds = array<i64: 2, 1>, scalar_prefetch = 0 : i64, scratch_operands = 0 : i64, tpu.core_type = #tpu.core_type<tc>, window_params = [{transform_indices = @transform_0, window_bounds = array<i64: 1, 18, 18, 4>}, {transform_indices = @transform_1, window_bounds = array<i64: 9, 4, 128>}, {transform_indices = @transform_2, window_bounds = array<i64: 1, 128>}, {transform_indices = @transform_3, window_bounds = array<i64: 1, 16, 16, 128>}]} {
    %c0 = arith.constant 0 : index
    %c0_0 = arith.constant 0 : index
    %c0_1 = arith.constant 0 : index
    %c0_2 = arith.constant 0 : index
    %0 = vector.load %arg2[%c0, %c0_0, %c0_1, %c0_2] : memref<1x18x18x4xbf16, #tpu.memory_space<vmem>>, vector<1x18x18x4xbf16>
    %1 = vector.shape_cast %0 : vector<1x18x18x4xbf16> to vector<18x18x4xbf16>
    %cst = arith.constant 0.000000e+00 : f32
    %2 = vector.broadcast %cst : f32 to vector<256x128xf32>
    %3 = vector.extract_strided_slice %1 {offsets = [0, 0, 0], sizes = [16, 16, 4], strides = [1, 1, 1]} : vector<18x18x4xbf16> to vector<16x16x4xbf16>
    %4 = vector.shape_cast %3 : vector<16x16x4xbf16> to vector<256x4xbf16>
    %c0_3 = arith.constant 0 : index
    %c0_4 = arith.constant 0 : index
    %c0_5 = arith.constant 0 : index
    %5 = vector.load %arg3[%c0_3, %c0_4, %c0_5] : memref<9x4x128xbf16, #tpu.memory_space<vmem>>, vector<1x4x128xbf16>
    %6 = vector.shape_cast %5 : vector<1x4x128xbf16> to vector<4x128xbf16>
    %cst_6 = arith.constant dense<0.000000e+00> : vector<256x128xf32>
    %7 = tpu.matmul %4, %6, %cst_6 {dimension_numbers = #tpu.dot_dimension_numbers<[1], [0], [0], [1], [0, 0, 1, 1], [], []>} : vector<256x4xbf16>, vector<4x128xbf16>, vector<256x128xf32> -> vector<256x128xf32>
    %8 = arith.addf %2, %7 : vector<256x128xf32>
    %9 = vector.extract_strided_slice %1 {offsets = [0, 1, 0], sizes = [16, 16, 4], strides = [1, 1, 1]} : vector<18x18x4xbf16> to vector<16x16x4xbf16>
    %10 = vector.shape_cast %9 : vector<16x16x4xbf16> to vector<256x4xbf16>
    %c1 = arith.constant 1 : index
    %c0_7 = arith.constant 0 : index
    %c0_8 = arith.constant 0 : index
    %11 = vector.load %arg3[%c1, %c0_7, %c0_8] : memref<9x4x128xbf16, #tpu.memory_space<vmem>>, vector<1x4x128xbf16>
    %12 = vector.shape_cast %11 : vector<1x4x128xbf16> to vector<4x128xbf16>
    %cst_9 = arith.constant dense<0.000000e+00> : vector<256x128xf32>
    %13 = tpu.matmul %10, %12, %cst_9 {dimension_numbers = #tpu.dot_dimension_numbers<[1], [0], [0], [1], [0, 0, 1, 1], [], []>} : vector<256x4xbf16>, vector<4x128xbf16>, vector<256x128xf32> -> vector<256x128xf32>
    %14 = arith.addf %8, %13 : vector<256x128xf32>
    %15 = vector.extract_strided_slice %1 {offsets = [0, 2, 0], sizes = [16, 16, 4], strides = [1, 1, 1]} : vector<18x18x4xbf16> to vector<16x16x4xbf16>
    %16 = vector.shape_cast %15 : vector<16x16x4xbf16> to vector<256x4xbf16>
    %c2 = arith.constant 2 : index
    %c0_10 = arith.constant 0 : index
    %c0_11 = arith.constant 0 : index
    %17 = vector.load %arg3[%c2, %c0_10, %c0_11] : memref<9x4x128xbf16, #tpu.memory_space<vmem>>, vector<1x4x128xbf16>
    %18 = vector.shape_cast %17 : vector<1x4x128xbf16> to vector<4x128xbf16>
    %cst_12 = arith.constant dense<0.000000e+00> : vector<256x128xf32>
    %19 = tpu.matmul %16, %18, %cst_12 {dimension_numbers = #tpu.dot_dimension_numbers<[1], [0], [0], [1], [0, 0, 1, 1], [], []>} : vector<256x4xbf16>, vector<4x128xbf16>, vector<256x128xf32> -> vector<256x128xf32>
    %20 = arith.addf %14, %19 : vector<256x128xf32>
    %21 = vector.extract_strided_slice %1 {offsets = [1, 0, 0], sizes = [16, 16, 4], strides = [1, 1, 1]} : vector<18x18x4xbf16> to vector<16x16x4xbf16>
    %22 = vector.shape_cast %21 : vector<16x16x4xbf16> to vector<256x4xbf16>
    %c3 = arith.constant 3 : index
    %c0_13 = arith.constant 0 : index
    %c0_14 = arith.constant 0 : index
    %23 = vector.load %arg3[%c3, %c0_13, %c0_14] : memref<9x4x128xbf16, #tpu.memory_space<vmem>>, vector<1x4x128xbf16>
    %24 = vector.shape_cast %23 : vector<1x4x128xbf16> to vector<4x128xbf16>
    %cst_15 = arith.constant dense<0.000000e+00> : vector<256x128xf32>
    %25 = tpu.matmul %22, %24, %cst_15 {dimension_numbers = #tpu.dot_dimension_numbers<[1], [0], [0], [1], [0, 0, 1, 1], [], []>} : vector<256x4xbf16>, vector<4x128xbf16>, vector<256x128xf32> -> vector<256x128xf32>
    %26 = arith.addf %20, %25 : vector<256x128xf32>
    %27 = vector.extract_strided_slice %1 {offsets = [1, 1, 0], sizes = [16, 16, 4], strides = [1, 1, 1]} : vector<18x18x4xbf16> to vector<16x16x4xbf16>
    %28 = vector.shape_cast %27 : vector<16x16x4xbf16> to vector<256x4xbf16>
    %c4 = arith.constant 4 : index
    %c0_16 = arith.constant 0 : index
    %c0_17 = arith.constant 0 : index
    %29 = vector.load %arg3[%c4, %c0_16, %c0_17] : memref<9x4x128xbf16, #tpu.memory_space<vmem>>, vector<1x4x128xbf16>
    %30 = vector.shape_cast %29 : vector<1x4x128xbf16> to vector<4x128xbf16>
    %cst_18 = arith.constant dense<0.000000e+00> : vector<256x128xf32>
    %31 = tpu.matmul %28, %30, %cst_18 {dimension_numbers = #tpu.dot_dimension_numbers<[1], [0], [0], [1], [0, 0, 1, 1], [], []>} : vector<256x4xbf16>, vector<4x128xbf16>, vector<256x128xf32> -> vector<256x128xf32>
    %32 = arith.addf %26, %31 : vector<256x128xf32>
    %33 = vector.extract_strided_slice %1 {offsets = [1, 2, 0], sizes = [16, 16, 4], strides = [1, 1, 1]} : vector<18x18x4xbf16> to vector<16x16x4xbf16>
    %34 = vector.shape_cast %33 : vector<16x16x4xbf16> to vector<256x4xbf16>
    %c5 = arith.constant 5 : index
    %c0_19 = arith.constant 0 : index
    %c0_20 = arith.constant 0 : index
    %35 = vector.load %arg3[%c5, %c0_19, %c0_20] : memref<9x4x128xbf16, #tpu.memory_space<vmem>>, vector<1x4x128xbf16>
    %36 = vector.shape_cast %35 : vector<1x4x128xbf16> to vector<4x128xbf16>
    %cst_21 = arith.constant dense<0.000000e+00> : vector<256x128xf32>
    %37 = tpu.matmul %34, %36, %cst_21 {dimension_numbers = #tpu.dot_dimension_numbers<[1], [0], [0], [1], [0, 0, 1, 1], [], []>} : vector<256x4xbf16>, vector<4x128xbf16>, vector<256x128xf32> -> vector<256x128xf32>
    %38 = arith.addf %32, %37 : vector<256x128xf32>
    %39 = vector.extract_strided_slice %1 {offsets = [2, 0, 0], sizes = [16, 16, 4], strides = [1, 1, 1]} : vector<18x18x4xbf16> to vector<16x16x4xbf16>
    %40 = vector.shape_cast %39 : vector<16x16x4xbf16> to vector<256x4xbf16>
    %c6 = arith.constant 6 : index
    %c0_22 = arith.constant 0 : index
    %c0_23 = arith.constant 0 : index
    %41 = vector.load %arg3[%c6, %c0_22, %c0_23] : memref<9x4x128xbf16, #tpu.memory_space<vmem>>, vector<1x4x128xbf16>
    %42 = vector.shape_cast %41 : vector<1x4x128xbf16> to vector<4x128xbf16>
    %cst_24 = arith.constant dense<0.000000e+00> : vector<256x128xf32>
    %43 = tpu.matmul %40, %42, %cst_24 {dimension_numbers = #tpu.dot_dimension_numbers<[1], [0], [0], [1], [0, 0, 1, 1], [], []>} : vector<256x4xbf16>, vector<4x128xbf16>, vector<256x128xf32> -> vector<256x128xf32>
    %44 = arith.addf %38, %43 : vector<256x128xf32>
    %45 = vector.extract_strided_slice %1 {offsets = [2, 1, 0], sizes = [16, 16, 4], strides = [1, 1, 1]} : vector<18x18x4xbf16> to vector<16x16x4xbf16>
    %46 = vector.shape_cast %45 : vector<16x16x4xbf16> to vector<256x4xbf16>
    %c7 = arith.constant 7 : index
    %c0_25 = arith.constant 0 : index
    %c0_26 = arith.constant 0 : index
    %47 = vector.load %arg3[%c7, %c0_25, %c0_26] : memref<9x4x128xbf16, #tpu.memory_space<vmem>>, vector<1x4x128xbf16>
    %48 = vector.shape_cast %47 : vector<1x4x128xbf16> to vector<4x128xbf16>
    %cst_27 = arith.constant dense<0.000000e+00> : vector<256x128xf32>
    %49 = tpu.matmul %46, %48, %cst_27 {dimension_numbers = #tpu.dot_dimension_numbers<[1], [0], [0], [1], [0, 0, 1, 1], [], []>} : vector<256x4xbf16>, vector<4x128xbf16>, vector<256x128xf32> -> vector<256x128xf32>
    %50 = arith.addf %44, %49 : vector<256x128xf32>
    %51 = vector.extract_strided_slice %1 {offsets = [2, 2, 0], sizes = [16, 16, 4], strides = [1, 1, 1]} : vector<18x18x4xbf16> to vector<16x16x4xbf16>
    %52 = vector.shape_cast %51 : vector<16x16x4xbf16> to vector<256x4xbf16>
    %c8 = arith.constant 8 : index
    %c0_28 = arith.constant 0 : index
    %c0_29 = arith.constant 0 : index
    %53 = vector.load %arg3[%c8, %c0_28, %c0_29] : memref<9x4x128xbf16, #tpu.memory_space<vmem>>, vector<1x4x128xbf16>
    %54 = vector.shape_cast %53 : vector<1x4x128xbf16> to vector<4x128xbf16>
    %cst_30 = arith.constant dense<0.000000e+00> : vector<256x128xf32>
    %55 = tpu.matmul %52, %54, %cst_30 {dimension_numbers = #tpu.dot_dimension_numbers<[1], [0], [0], [1], [0, 0, 1, 1], [], []>} : vector<256x4xbf16>, vector<4x128xbf16>, vector<256x128xf32> -> vector<256x128xf32>
    %56 = arith.addf %50, %55 : vector<256x128xf32>
    %c0_31 = arith.constant 0 : index
    %c0_32 = arith.constant 0 : index
    %57 = vector.load %arg4[%c0_31, %c0_32] : memref<1x128xf32, #tpu.memory_space<vmem>>, vector<1x128xf32>
    %58 = vector.broadcast %57 : vector<1x128xf32> to vector<256x128xf32>
    %59 = arith.addf %56, %58 : vector<256x128xf32>
    %cst_33 = arith.constant 2.000000e+01 : f32
    %60 = vector.broadcast %cst_33 : f32 to vector<256x128xf32>
    %61 = arith.minimumf %59, %60 : vector<256x128xf32>
    %62 = math.exp %61 : vector<256x128xf32>
    %cst_34 = arith.constant 2.000000e+00 : f32
    %63 = vector.broadcast %cst_34 : f32 to vector<256x128xf32>
    %64 = arith.addf %62, %63 : vector<256x128xf32>
    %65 = arith.mulf %62, %64 : vector<256x128xf32>
    %cst_35 = arith.constant 2.000000e+01 : f32
    %66 = vector.broadcast %cst_35 : f32 to vector<256x128xf32>
    %67 = arith.cmpf ogt, %59, %66 : vector<256x128xf32>
    %68 = arith.mulf %59, %65 : vector<256x128xf32>
    %cst_36 = arith.constant 2.000000e+00 : f32
    %69 = vector.broadcast %cst_36 : f32 to vector<256x128xf32>
    %70 = arith.addf %65, %69 : vector<256x128xf32>
    %71 = tpu.reciprocal %70 {approx = true} : vector<256x128xf32> -> vector<256x128xf32>
    %72 = arith.mulf %68, %71 : vector<256x128xf32>
    %73 = arith.select %67, %59, %72 : vector<256x128xi1>, vector<256x128xf32>
    %74 = vector.shape_cast %73 : vector<256x128xf32> to vector<16x16x128xf32>
    %c0_37 = arith.constant 0 : index
    %c0_38 = arith.constant 0 : index
    %c0_39 = arith.constant 0 : index
    %c0_40 = arith.constant 0 : index
    %75 = vector.load %arg5[%c0_37, %c0_38, %c0_39, %c0_40] : memref<1x16x16x128xf32, #tpu.memory_space<vmem>>, vector<1x16x16x128xf32>
    %76 = vector.shape_cast %75 : vector<1x16x16x128xf32> to vector<16x16x128xf32>
    %77 = vector.shape_cast %74 : vector<16x16x128xf32> to vector<1x16x16x128xf32>
    tpu.vector_store %arg5[%c0_37, %c0_38, %c0_39, %c0_40], %77 {strides = array<i32>} : memref<1x16x16x128xf32, #tpu.memory_space<vmem>>, vector<1x16x16x128xf32>,
    return
  }
  func.func @transform_0(%arg0: i32, %arg1: i32) -> (i32, i32, i32, i32) {
    %c0_i32 = arith.constant 0 : i32
    %c0_i32_0 = arith.constant 0 : i32
    %c0_i32_1 = arith.constant 0 : i32
    %c0_i32_2 = arith.constant 0 : i32
    return %arg0, %c0_i32, %c0_i32_0, %c0_i32_1 : i32, i32, i32, i32
  }
  func.func @transform_1(%arg0: i32, %arg1: i32) -> (i32, i32, i32) {
    %c0_i32 = arith.constant 0 : i32
    %c0_i32_0 = arith.constant 0 : i32
    %c0_i32_1 = arith.constant 0 : i32
    return %c0_i32, %c0_i32_0, %arg1 : i32, i32, i32
  }
  func.func @transform_2(%arg0: i32, %arg1: i32) -> (i32, i32) {
    %c0_i32 = arith.constant 0 : i32
    %c0_i32_0 = arith.constant 0 : i32
    return %c0_i32, %arg1 : i32, i32
  }
  func.func @transform_3(%arg0: i32, %arg1: i32) -> (i32, i32, i32, i32) {
    %c0_i32 = arith.constant 0 : i32
    %c0_i32_0 = arith.constant 0 : i32
    %c0_i32_1 = arith.constant 0 : i32
    return %arg0, %c0_i32, %c0_i32_0, %arg1 : i32, i32, i32, i32
  }
}

</mosaic_0001>

<bundles_post_ra>
// kernel: tpu_custom_call.1
= control target key start
LH: loop header
LB: loop body
LE: loop exit
PB: predicated region body
PF: predicated region fallthrough
CT: control target
= control target key end

     0   :  { %8 = vsyncpa [#allocation3], 0  ;;  %s4805_s0 = inlined_call_operand.vmem [shape: bf16[2,18,18,4], index: 0, kind: input, shape index: {}]   ;;  %s4806_s1 = inlined_call_operand.vmem [shape: bf16[9,4,128], index: 1, kind: input, shape index: {}]   ;;  %s4807_s2 = inlined_call_operand.vmem [shape: f32[1,128], index: 2, kind: input, shape index: {}]   ;;  %s4808_s3 = inlined_call_operand.hbm [shape: f32[2,16,16,128], index: 3, kind: output, shape index: {}]  }
   0x1   :  { %10 = vsyncpa [#allocation3 + $0x1], 0  ;;  %s3394_s12 = smov 0   ;;  %s3396_s13 = smov 0  }
   0x2   :  { %s3398_s14 = smov 0   ;;  %s3400_s15 = smov 0  }
   0x3   :  { %s3402_s16 = smov 0   ;;  %s3404_s17 = smov 0  }
   0x4 LB: > { %s2818_s18 = sadd.s32 4294967295, %s3370_s17   ;;  %s2819_s19 = sadd.s32 4294967294, %s3370_s17   ;;  %s3370_s17 = sphi %s3404_s17, %s16_s17   ;;  %s3366_s16 = sphi %s3402_s16, %s4953_s16   ;;  %s3362_s15 = sphi %s3400_s15, %s4952_s15   ;;  %s3358_s14 = sphi %s3398_s14, %s4951_s14   ;;  %s3354_s13 = sphi %s3396_s13, %s4950_s13   ;;  %s3350_s12 = sphi %s3394_s12, %s4949_s12  }
   0x5   : > { %s28_s20 = sadd.s32 1, %s3366_s16  ;;  %s115_s21 = sadd.s32 1, %s3358_s14 }
   0x6   : > { %p30_p0 = scmp.ge.s32.totalorder %s28_s20, 2  ;;  %p125_p1 = scmp.ne.s32.totalorder %s3358_s14, %s3354_s13 }
   0x7   : > { %p126_p2 = scmp.eq.s32.totalorder %s2818_s18, 1  ;;  %p131_p3 = scmp.ne.s32.totalorder %s3354_s13, %s3350_s12 }
   0x8   : > { %s4955_s20 = smov (%p30_p0, %s28_s20), 0  ;;  %p132_p5 = scmp.eq.s32.totalorder %s2819_s19, 1 }
   0x9   : > { %p3434_p4 = por %p126_p2, %p125_p1  ;;  %s110_s23 = ssub.s32 %s3366_s16, %s4955_s20 }
   0xa   : > { %p2824_p6 = scmp.ge.s32.totalorder %s3370_s17, 1  ;;  %p113_p7 = scmp.eq.s32.totalorder %s110_s23, 0 }
   0xb   : > { %p3441_p8 = por %p132_p5, %p131_p3  ;;  %p171_p9 = scmp.lt.s32.totalorder %s3370_s17, 3 }
   0xc   : > { %s3447_s25 = scalar_select %p113_p7, %s3358_s14, %s115_s21  }
   0xd   : > { %p172_p10 = pnand %p2824_p6, %p171_p9 }
   0xf   : > { %175 = sbr.rel (%p172_p10) target bundleno = 796 (0x31c), region = 32 }
  0x14   : > { %v2827_v0 = vld [vmem:[%s4806_s1 + $0x2] sm:$0x3]  ;;  %vm756_vm0 = vcmask 1041408   ;;  %p202_p11 = scmp.lt.s32.totalorder %s3362_s15, 1  ;;  %v2940_v2 = vld [vmem:[%s4806_s1 + $0x4] sm:$0x3] }
  0x15   : > { %v758_v1 = vsel %vm756_vm0, %v2827_v0, 0  ;;  %v1299_v3 = vsel %vm756_vm0, %v2940_v2, 0  ;;  %v2957_v4 = vld [vmem:[%s4806_s1 + $0x6] sm:$0x3]  ;;  %v269_v5 = vld [vmem:[%s4806_s1] sm:$0x3] }
  0x16   : > { %3093 = vmatpush.bf16.msra.mxu1 %v758_v1  ;;  %3094 = vmatpush.bf16.msra.mxu2 %v758_v1  ;;  %s203_s30 = scalar_select %p202_p11, %s3362_s15, 1  ;;  %v2978_v6 = vld [vmem:[%s4806_s1 + $0x8] sm:$0x3]  ;;  %v1433_v7 = vsel %vm756_vm0, %v2957_v4, 0  ;;  %v978_v8 = vsel %vm756_vm0, %v269_v5, 0  ;;  %vm707_vm4 = vcmask 31744  }
  0x17   : > { %3095 = vmatpush.bf16.msra.mxu3 %v758_v1  ;;  %767 = vmatpush.bf16.msra.mxu0 %v758_v1  ;;  %v1589_v9 = vsel %vm756_vm0, %v2978_v6, 0  ;;  %vm270_vm1 = vsmask.f32 3328  ;;  %vm271_vm2 = vsmask.f32 7440  ;;  %vm1085_vm5 = vcmask 1042432  }
  0x18   : > { %s3096_s10 = smul.u32 216, %s203_s30  ;;  %vm3501_vm3 = vmor %vm270_vm1, %vm271_vm2  ;;  %vm1086_vm6 = vcmask 1046532   ;;  %s199_s7 = sand.u32 1, %s3354_s13  }
  0x19   : > { %vm3804_vm7 = vmor %vm1085_vm5, %vm1086_vm6  ;;  %s2825_s8 = sshll.u32 %s199_s7, 8  ;;  %s3092_s18 = sshll.u32 %s3362_s15, 8 }
  0x1a   : > { %1308 = vmatpush.bf16.msrb.mxu2 %v1299_v3  ;;  %987 = vmatpush.bf16.msrb.mxu1 %v978_v8  ;;  %s3474_s19 = scalar_lea.vmem %s4805_s0, %s3096_s10  ;;  %s4433_s9 = scalar_lea.vmem [#allocation2], %s2825_s8 }
  0x1b   : > { %1442 = vmatpush.bf16.msrb.mxu3 %v1433_v7  ;;  %1598 = vmatpush.bf16.msrb.mxu0 %v1589_v9  ;;  %v3477_v10 = vld [vmem:[%s3474_s19 + $0x30] sm:$0xf]  ;;  %v3480_v11 = vld [vmem:[%s3474_s19 + $0x34] sm:$0xf]  ;;  %v3483_v12 = vld [vmem:[%s3474_s19 + $0x38] sm:$0x1]  ;;  %s2715_s23 = scalar_lea.hbm %s4808_s3, %s3092_s18 }
  0x1c   : > { %v370_v13 = vshrl.u32 %v3477_v10, 16  ;;  %v373_v14 = vshll.u32 %v3477_v10, 16  ;;  %v379_v15 = vshll.u32 %v3480_v11, 16  ;;  %v383_v16 = vshrl.u32 %v3480_v11, 16  ;;  %v239_v17 = vld [vmem:[%s3474_s19 + $0x60] sm:$0xf] }
  0x1d   : > { %v389_v18 = vshll.u32 %v3483_v12, 16  ;;  %v3492_v19 = vld [vmem:[%s3474_s19 + $0x64] sm:$0xf]  ;;  %v241_v20 = vld [vmem:[%s3474_s19 + $0x68] sm:$0x1]  ;;  %v466_v21 = vshrl.u32 %v239_v17, 16 }
  0x1e   : > { %v372_v22 = vrot.slane %v370_v13, 4  ;;  %v375_v23 = vrot.slane %v373_v14, 5  ;;  %v381_v24 = vrot.slane %v379_v15, 5  ;;  %v385_v25 = vrot.slane %v383_v16, 4  ;;  %v251_v26 = vld [vmem:[%s3474_s19 + $0x90] sm:$0xf] }
  0x1f   : > { %v391_v27 = vrot.slane %v389_v18, 5  ;;  %v468_v28 = vrot.slane %v466_v21, 4  ;;  %v469_v29 = vshll.u32 %v239_v17, 16  ;;  %v475_v30 = vshll.u32 %v3492_v19, 16  ;;  %v252_v35 = vld [vmem:[%s3474_s19 + $0x94] sm:$0xf] }
  0x20   : > { %v376_v31 = vor.u32 %v375_v23, %v372_v22  ;;  %v386_v32 = vor.u32 %v385_v25, %v381_v24  ;;  %v479_v33 = vshrl.u32 %v3492_v19, 16  ;;  %v485_v34 = vshll.u32 %v241_v20, 16  ;;  %v253_v45 = vld [vmem:[%s3474_s19 + $0x98] sm:$0x1]  ;;  %v3511_v61 = vld [vmem:[%s3474_s19] sm:$0xf] }
  0x21   : > { %v471_v37 = vrot.slane %v469_v29, 5  ;;  %v477_v38 = vrot.slane %v475_v30, 5  ;;  %v562_v39 = vshrl.u32 %v251_v26, 16  ;;  %v565_v47 = vshll.u32 %v251_v26, 16  ;;  %v3518_v1 = vld [vmem:[%s3474_s19 + $0x4] sm:$0xf] }
  0x22   : > { %v377_v40 = vrot.slane %v376_v31, 4  ;;  %v387_v41 = vrot.slane %v386_v32, 4  ;;  %v481_v42 = vrot.slane %v479_v33, 4  ;;  %v487_v43 = vrot.slane %v485_v34, 5  ;;  %v3521_v2 = vld [vmem:[%s3474_s19 + $0x8] sm:$0x1] }
  0x23   : > { %v472_v44 = vor.u32 %v471_v37, %v468_v28  ;;  %v564_v46 = vrot.slane %v562_v39, 4  ;;  %v571_v48 = vshll.u32 %v252_v35, 16  ;;  %v575_v52 = vshrl.u32 %v252_v35, 16  ;;  %v3537_v23 = vld [vmem:[%s3474_s19 + $0x3c] sm:$0xf]  ;;  %s2716_s26 = sshll.u32 %s4433_s9, 4  ;;  %s2717_s26 = int_to_ptr.vmem [resolvable:$true] %s2716_s26 }
  0x24   : > { %v382_v49 = vsel %vm3501_vm3, %v377_v40, %v381_v24  ;;  %v392_v50 = vsel %vm3501_vm3, %v387_v41, %v391_v27  ;;  %v482_v51 = vor.u32 %v481_v42, %v477_v38  ;;  %v567_v56 = vrot.slane %v565_v47, 5  ;;  %v3540_v24 = vld [vmem:[%s3474_s19 + $0x40] sm:$0xf]  ;;  %v3545_v29 = vld [vmem:[%s3474_s19 + $0x44] sm:$0x1]  ;;  %s2718_s27 = sshll.u32 %s2715_s23, 4  ;;  %s2719_s27 = int_to_ptr.hbm [resolvable:$true] %s2718_s27 }
  0x25   : > { %v667_v53 = vunpack.c.l.b16 %v382_v49  ;;  %v668_v54 = vunpack.c.l.b16 %v392_v50  ;;  %v473_v55 = vrot.slane %v472_v44, 4  ;;  %v573_v58 = vrot.slane %v571_v48, 5  ;;  %v3560_v47 = vld [vmem:[%s3474_s19 + $0x70] sm:$0xf]  ;;  %s2703_s15 = scalar_lea.sflag [#allocation3], %s199_s7  ;;  %s3306_s28 = sshra.s32 %s2719_s27, 4  ;;  %s3307_s28 = int_to_ptr.hbm [resolvable:$true] %s3306_s28 }
  0x26   : > { %v483_v57 = vrot.slane %v482_v51, 4  ;;  %v577_v59 = vrot.slane %v575_v52, 4  ;;  %v581_v60 = vshll.u32 %v253_v45, 16  ;;  %v568_v0 = vor.u32 %v567_v56, %v564_v46  ;;  %v3567_v51 = vld [vmem:[%s3474_s19 + $0x74] sm:$0x1]  ;;  %s3308_s29 = scalar_lea.hbm %s3307_s28, 256  ;;  %p3313_p1 = scmp.lt.s32.totalorder %s3307_s28, %s4808_s3 }
  0x27   : > { %v3513_v62 = vpack.c.b16 %v668_v54, %v667_v53  ;;  %v478_v63 = vsel %vm3501_vm3, %v473_v55, %v477_v38  ;;  %v274_v9 = vshrl.u32 %v3511_v61, 16  ;;  %v277_v13 = vshll.u32 %v3511_v61, 16  ;;  %v3553_v38 = vld [vmem:[%s3474_s19 + $0x6c] sm:$0xf]  ;;  %p3309_p12 = scmp.ne.s32.totalorder %s3307_s28, %s3308_s29  ;;  %s3312_s5 = scalar_lea.hbm %s4808_s3, 512 }
  0x28   : > { %v488_v3 = vsel %vm3501_vm3, %v483_v57, %v487_v43  ;;  %v675_v4 = vunpack.c.l.b16 %v478_v63  ;;  %v578_v5 = vor.u32 %v577_v59, %v573_v58  ;;  %v583_v6 = vrot.slane %v581_v60, 5  ;;  %p3314_p2 = scmp.lt.s32.totalorder %s3312_s5, %s3308_s29 }
  0x29   : > { %2832 = vmatmul.msk.bf16.vlgmr.msra.gmra.mxu1 %vm707_vm4, %v3513_v62  ;;  %v676_v7 = vunpack.c.l.b16 %v488_v3  ;;  %v569_v8 = vrot.slane %v568_v0, 4  ;;  %v283_v15 = vshll.u32 %v3518_v1, 16  ;;  %v287_v16 = vshrl.u32 %v3518_v1, 16  ;;  %p3310_p13 = pnand %p3309_p12, %p3434_p4 }
  0x2a   : > { %v579_v14 = vrot.slane %v578_v5, 4  ;;  %v293_v17 = vshll.u32 %v3521_v2, 16  ;;  %v276_v21 = vrot.slane %v274_v9, 4  ;;  %v279_v22 = vrot.slane %v277_v13, 5  ;;  %v254_v5 = vld [vmem:[%s3474_s19 + $0x9c] sm:$0xf]  ;;  %p3315_p3 = por %p3314_p2, %p3313_p1 }
  0x2b   : > { %v3532_v18 = vpack.c.b16 %v676_v7, %v675_v4  ;;  %v574_v20 = vsel %vm3501_vm3, %v569_v8, %v573_v58  ;;  %v285_v27 = vrot.slane %v283_v15, 5  ;;  %v289_v28 = vrot.slane %v287_v16, 4  ;;  %v255_v9 = vld [vmem:[%s3474_s19 + $0xa0] sm:$0xf]  ;;  %p3311_p0 = pneg %p3310_p13 }
  0x2c   : > { %v584_v25 = vsel %vm3501_vm3, %v579_v14, %v583_v6  ;;  %v683_v26 = vunpack.c.l.b16 %v574_v20  ;;  %v280_v31 = vor.u32 %v279_v22, %v276_v21  ;;  %v295_v32 = vrot.slane %v293_v17, 5  ;;  %v256_v17 = vld [vmem:[%s3474_s19 + $0xa4] sm:$0x1] }
  0x2d   : > { %4853 = vst [vmem:[#allocation5_spill] sm:$0xff] %v3532_v18  ;;  %2836 = vmatmul.msk.bf16.vlgmr.msra.gmra.mxu2 %vm707_vm4, %v3532_v18  ;;  %v684_v30 = vunpack.c.l.b16 %v584_v25  ;;  %v290_v33 = vor.u32 %v289_v28, %v285_v27  ;;  %v394_v34 = vshrl.u32 %v3537_v23, 16  ;;  %v397_v35 = vshll.u32 %v3537_v23, 16  ;;  %p3316_p5 = pnand %p3315_p3, %p3311_p0 }
  0x2e   : > { %v403_v37 = vshll.u32 %v3540_v24, 16  ;;  %v281_v40 = vrot.slane %v280_v31, 4  ;;  %v407_v41 = vshrl.u32 %v3540_v24, 16  ;;  %v413_v42 = vshll.u32 %v3545_v29, 16 }
  0x2f   : > { %v3555_v39 = vpack.c.b16 %v684_v30, %v683_v26  ;;  %v291_v43 = vrot.slane %v290_v33, 4  ;;  %v396_v44 = vrot.slane %v394_v34, 4  ;;  %v399_v45 = vrot.slane %v397_v35, 5  ;;  %v3585_v35 = vld [vmem:[%s3474_s19 + $0xc] sm:$0xf] }
  0x30   : > { %v405_v46 = vrot.slane %v403_v37, 5  ;;  %v286_v48 = vsel %vm3501_vm3, %v281_v40, %v285_v27  ;;  %v409_v49 = vrot.slane %v407_v41, 4  ;;  %v415_v50 = vrot.slane %v413_v42, 5 }
  0x31   : > { %4854 = vst [vmem:[#allocation6_spill] sm:$0xff] %v3555_v39  ;;  %2840 = vmatmul.msk.bf16.vlgmr.msra.gmra.mxu3 %vm707_vm4, %v3555_v39  ;;  %v490_v52 = vshrl.u32 %v3553_v38, 16  ;;  %v296_v53 = vsel %vm3501_vm3, %v291_v43, %v295_v32  ;;  %v659_v54 = vunpack.c.l.b16 %v286_v48  ;;  %v400_v55 = vor.u32 %v399_v45, %v396_v44  ;;  %v3592_v43 = vld [vmem:[%s3474_s19 + $0x10] sm:$0xf]  ;;  %v3595_v48 = vld [vmem:[%s3474_s19 + $0x14] sm:$0x1] }
  0x32   : > { %v493_v56 = vshll.u32 %v3553_v38, 16  ;;  %v660_v57 = vunpack.c.l.b16 %v296_v53  ;;  %v410_v58 = vor.u32 %v409_v49, %v405_v46  ;;  %v499_v60 = vshll.u32 %v3560_v47, 16  ;;  %v3772_v39 = vld [vmem:[%s3474_s19 + $0x2c] sm:$0x1] }
  0x33   : > { %v492_v59 = vrot.slane %v490_v52, 4  ;;  %v401_v63 = vrot.slane %v400_v55, 4  ;;  %v503_v3 = vshrl.u32 %v3560_v47, 16  ;;  %v509_v4 = vshll.u32 %v3567_v51, 16 }
  0x34   : > { %v495_v0 = vrot.slane %v493_v56, 5  ;;  %v691_v6 = vpack.c.b16 %v660_v57, %v659_v54  ;;  %v411_v7 = vrot.slane %v410_v58, 4  ;;  %v501_v8 = vrot.slane %v499_v60, 5  ;;  %v3605_v58 = vld [vmem:[%s3474_s19 + $0x48] sm:$0xf] }
  0x35   : > { %v406_v13 = vsel %vm3501_vm3, %v401_v63, %v405_v46  ;;  %v505_v15 = vrot.slane %v503_v3, 4  ;;  %v511_v16 = vrot.slane %v509_v4, 5  ;;  %v586_v22 = vshrl.u32 %v254_v5, 16  ;;  %v3610_v3 = vld [vmem:[%s3474_s19 + $0x4c] sm:$0xf] }
  0x36   : > { %v496_v14 = vor.u32 %v495_v0, %v492_v59  ;;  %2828 = vmatmul.msk.bf16.vlgmr.msra.gmra.mxu0 %vm707_vm4, %v691_v6  ;;  %v416_v20 = vsel %vm3501_vm3, %v411_v7, %v415_v50  ;;  %v669_v21 = vunpack.c.l.b16 %v406_v13  ;;  %v589_v25 = vshll.u32 %v254_v5, 16 }
  0x37   : > { %v670_v26 = vunpack.c.l.b16 %v416_v20  ;;  %v506_v28 = vor.u32 %v505_v15, %v501_v8  ;;  %v595_v30 = vshll.u32 %v255_v9, 16  ;;  %v588_v31 = vrot.slane %v586_v22, 4  ;;  %v3617_v15 = vld [vmem:[%s3474_s19 + $0x50] sm:$0x1] }
  0x38   : > { %v497_v27 = vrot.slane %v496_v14, 4  ;;  %v591_v32 = vrot.slane %v589_v25, 5  ;;  %v599_v33 = vshrl.u32 %v255_v9, 16  ;;  %v605_v34 = vshll.u32 %v256_v17, 16 }
  0x39   : > { %v3587_v37 = vpack.c.b16 %v670_v26, %v669_v21  ;;  %v507_v41 = vrot.slane %v506_v28, 4  ;;  %v597_v42 = vrot.slane %v595_v30, 5  ;;  %v298_v52 = vshrl.u32 %v3585_v35, 16  ;;  %v3628_v28 = vld [vmem:[%s3474_s19 + $0x78] sm:$0xf] }
  0x3a   : > { %v502_v40 = vsel %vm3501_vm3, %v497_v27, %v501_v8  ;;  %v592_v45 = vor.u32 %v591_v32, %v588_v31  ;;  %v601_v46 = vrot.slane %v599_v33, 4  ;;  %v607_v50 = vrot.slane %v605_v34, 5  ;;  %v3632_v34 = vld [vmem:[%s3474_s19 + $0x7c] sm:$0xf] }
  0x3b   : > { %v677_v44 = vunpack.c.l.b16 %v502_v40  ;;  %2833 = vmatmul.msk.bf16.gmra.mxu1 %vm707_vm4, %v3587_v37  ;;  %v512_v49 = vsel %vm3501_vm3, %v507_v41, %v511_v16  ;;  %v301_v53 = vshll.u32 %v3585_v35, 16  ;;  %v307_v57 = vshll.u32 %v3592_v43, 16 }
  0x3c   : > { %v678_v54 = vunpack.c.l.b16 %v512_v49  ;;  %v593_v55 = vrot.slane %v592_v45, 4  ;;  %v602_v56 = vor.u32 %v601_v46, %v597_v42  ;;  %v300_v59 = vrot.slane %v298_v52, 4 }
  0x3d   : > { %v303_v60 = vrot.slane %v301_v53, 5  ;;  %v311_v63 = vshrl.u32 %v3592_v43, 16  ;;  %v317_v0 = vshll.u32 %v3595_v48, 16  ;;  %v309_v7 = vrot.slane %v307_v57, 5 }
  0x3e   : > { %v3612_v4 = vpack.c.b16 %v678_v54, %v677_v44  ;;  %v598_v5 = vsel %vm3501_vm3, %v593_v55, %v597_v42  ;;  %v603_v6 = vrot.slane %v602_v56, 4  ;;  %v418_v17 = vshrl.u32 %v3605_v58, 16 }
  0x3f   : > { %v685_v8 = vunpack.c.l.b16 %v598_v5  ;;  %v304_v9 = vor.u32 %v303_v60, %v300_v59  ;;  %v313_v13 = vrot.slane %v311_v63, 4  ;;  %v319_v14 = vrot.slane %v317_v0, 5 }
  0x40   : > { %2837 = vmatmul.msk.bf16.gmra.mxu2 %vm707_vm4, %v3612_v4  ;;  %v608_v16 = vsel %vm3501_vm3, %v603_v6, %v607_v50  ;;  %v421_v20 = vshll.u32 %v3605_v58, 16  ;;  %v427_v21 = vshll.u32 %v3610_v3, 16  ;;  %v431_v27 = vshrl.u32 %v3610_v3, 16  ;;  %v3639_v50 = vld [vmem:[%s3474_s19 + $0x80] sm:$0x1] }
  0x41   : > { %v686_v22 = vunpack.c.l.b16 %v608_v16  ;;  %v305_v25 = vrot.slane %v304_v9, 4  ;;  %v314_v26 = vor.u32 %v313_v13, %v309_v7  ;;  %v420_v30 = vrot.slane %v418_v17, 4  ;;  %v3658_v16 = vld [vmem:[%s3474_s19 + $0xac] sm:$0xf]  ;;  %v3661_v17 = vld [vmem:[%s3474_s19 + $0xb0] sm:$0x1] }
  0x42   : > { %v423_v31 = vrot.slane %v421_v20, 5  ;;  %v429_v32 = vrot.slane %v427_v21, 5  ;;  %v437_v33 = vshll.u32 %v3617_v15, 16  ;;  %v433_v44 = vrot.slane %v431_v27, 4  ;;  %4857 = vst [vmem:[#allocation9_spill] sm:$0xff] %v3658_v16 }
  0x43   : > { %v3634_v40 = vpack.c.b16 %v686_v22, %v685_v8  ;;  %v310_v41 = vsel %vm3501_vm3, %v305_v25, %v309_v7  ;;  %v315_v42 = vrot.slane %v314_v26, 4  ;;  %v514_v52 = vshrl.u32 %v3628_v28, 16  ;;  %v3651_v8 = vld [vmem:[%s3474_s19 + $0xa8] sm:$0xf]  ;;  %4858 = vst [vmem:[#allocation10_spill] sm:$0xff] %v3661_v17 }
  0x44   : > { %v661_v45 = vunpack.c.l.b16 %v310_v41  ;;  %v424_v46 = vor.u32 %v423_v31, %v420_v30  ;;  %v439_v49 = vrot.slane %v437_v33, 5  ;;  %v434_v54 = vor.u32 %v433_v44, %v429_v32  ;;  %4856 = vst [vmem:[#allocation8_spill] sm:$0xff] %v3651_v8 }
  0x45   : > { %4855 = vst [vmem:[#allocation7_spill] sm:$0xff] %v3634_v40  ;;  %2841 = vmatmul.msk.bf16.gmra.mxu3 %vm707_vm4, %v3634_v40  ;;  %v320_v53 = vsel %vm3501_vm3, %v315_v42, %v319_v14  ;;  %v517_v55 = vshll.u32 %v3628_v28, 16  ;;  %v523_v56 = vshll.u32 %v3632_v34, 16  ;;  %v516_v60 = vrot.slane %v514_v52, 4  ;;  %v3675_v52 = vld [vmem:[%s3474_s19 + $0x18] sm:$0xf] }
  0x46   : > { %v662_v57 = vunpack.c.l.b16 %v320_v53  ;;  %v425_v59 = vrot.slane %v424_v46, 4  ;;  %v527_v63 = vshrl.u32 %v3632_v34, 16  ;;  %v435_v0 = vrot.slane %v434_v54, 4  ;;  %v3761_v40 = vld [vmem:[%s3474_s19 + $0x24] sm:$0xf] }
  0x47   : > { %v519_v5 = vrot.slane %v517_v55, 5  ;;  %v525_v6 = vrot.slane %v523_v56, 5  ;;  %v533_v7 = vshll.u32 %v3639_v50, 16  ;;  %v610_v30 = vshrl.u32 %v3651_v8, 16  ;;  %v3680_v56 = vld [vmem:[%s3474_s19 + $0x1c] sm:$0xf] }
  0x48   : > { %v3653_v9 = vpack.c.b16 %v662_v57, %v661_v45  ;;  %v430_v13 = vsel %vm3501_vm3, %v425_v59, %v429_v32  ;;  %v529_v14 = vrot.slane %v527_v63, 4  ;;  %v440_v20 = vsel %vm3501_vm3, %v435_v0, %v439_v49  ;;  %v3683_v57 = vld [vmem:[%s3474_s19 + $0x20] sm:$0x1] }
  0x49   : > { %v671_v21 = vunpack.c.l.b16 %v430_v13  ;;  %v520_v22 = vor.u32 %v519_v5, %v516_v60  ;;  %v535_v25 = vrot.slane %v533_v7, 5  ;;  %v672_v26 = vunpack.c.l.b16 %v440_v20 }
  0x4a   : > { %2829 = vmatmul.msk.bf16.gmra.mxu0 %vm707_vm4, %v3653_v9  ;;  %v530_v27 = vor.u32 %v529_v14, %v525_v6  ;;  %v613_v31 = vshll.u32 %v3651_v8, 16  ;;  %v619_v33 = vshll.u32 %v3658_v16, 16  ;;  %v623_v41 = vshrl.u32 %v3658_v16, 16 }
  0x4b   : > { %v521_v32 = vrot.slane %v520_v22, 4  ;;  %v629_v42 = vshll.u32 %v3661_v17, 16  ;;  %v3672_v44 = vpack.c.b16 %v672_v26, %v671_v21  ;;  %v612_v46 = vrot.slane %v610_v30, 4  ;;  %v3695_v26 = vld [vmem:[%s3474_s19 + $0x54] sm:$0xf] }
  0x4c   : > { %v531_v45 = vrot.slane %v530_v27, 4  ;;  %v615_v49 = vrot.slane %v613_v31, 5  ;;  %v621_v54 = vrot.slane %v619_v33, 5  ;;  %v625_v55 = vrot.slane %v623_v41, 4  ;;  %v3739_v17 = vld [vmem:[%s3474_s19 + $0xb4] sm:$0xf] }
  0x4d   : > { %4859 = vst [vmem:[#allocation11_spill] sm:$0xff] %v3672_v44  ;;  %v526_v53 = vsel %vm3501_vm3, %v521_v32, %v525_v6  ;;  %2834 = vmatmul.msk.bf16.gmra.mxu1 %vm707_vm4, %v3672_v44  ;;  %v631_v0 = vrot.slane %v629_v42, 5  ;;  %v322_v6 = vshrl.u32 %v3675_v52, 16  ;;  %v325_v13 = vshll.u32 %v3675_v52, 16  ;;  %v3700_v32 = vld [vmem:[%s3474_s19 + $0x58] sm:$0xf] }
  0x4e   : > { %v536_v59 = vsel %vm3501_vm3, %v531_v45, %v535_v25  ;;  %v679_v60 = vunpack.c.l.b16 %v526_v53  ;;  %v616_v63 = vor.u32 %v615_v49, %v612_v46  ;;  %v626_v7 = vor.u32 %v625_v55, %v621_v54  ;;  %v3705_v46 = vld [vmem:[%s3474_s19 + $0x5c] sm:$0x1]  ;;  %4862 = vst [vmem:[#allocation14_spill] sm:$0xff] %v3739_v17 }
  0x4f   : > { %v680_v5 = vunpack.c.l.b16 %v536_v59  ;;  %v331_v20 = vshll.u32 %v3680_v56, 16  ;;  %v335_v21 = vshrl.u32 %v3680_v56, 16  ;;  %v341_v22 = vshll.u32 %v3683_v57, 16 }
  0x50   : > { %v617_v14 = vrot.slane %v616_v63, 4  ;;  %v627_v27 = vrot.slane %v626_v7, 4  ;;  %v324_v30 = vrot.slane %v322_v6, 4  ;;  %v327_v31 = vrot.slane %v325_v13, 5  ;;  %v3715_v7 = vld [vmem:[%s3474_s19 + $0x84] sm:$0xf] }
  0x51   : > { %v3697_v25 = vpack.c.b16 %v680_v5, %v679_v60  ;;  %v333_v41 = vrot.slane %v331_v20, 5  ;;  %v337_v42 = vrot.slane %v335_v21, 4  ;;  %v343_v45 = vrot.slane %v341_v22, 5  ;;  %4860 = vst [vmem:[#allocation12_spill] sm:$0xff] %v3715_v7 }
  0x52   : > { %v622_v33 = vsel %vm3501_vm3, %v617_v14, %v621_v54  ;;  %v632_v49 = vsel %vm3501_vm3, %v627_v27, %v631_v0  ;;  %v328_v55 = vor.u32 %v327_v31, %v324_v30  ;;  %v442_v59 = vshrl.u32 %v3695_v26, 16  ;;  %v3722_v30 = vld [vmem:[%s3474_s19 + $0x88] sm:$0xf] }
  0x53   : > { %2838 = vmatmul.msk.bf16.gmra.mxu2 %vm707_vm4, %v3697_v25  ;;  %v687_v53 = vunpack.c.l.b16 %v622_v33  ;;  %v688_v60 = vunpack.c.l.b16 %v632_v49  ;;  %v338_v63 = vor.u32 %v337_v42, %v333_v41  ;;  %v445_v54 = vshll.u32 %v3695_v26, 16  ;;  %v3727_v49 = vld [vmem:[%s3474_s19 + $0x8c] sm:$0x1] }
  0x54   : > { %v451_v5 = vshll.u32 %v3700_v32, 16  ;;  %v329_v6 = vrot.slane %v328_v55, 4  ;;  %v444_v13 = vrot.slane %v442_v59, 4  ;;  %v455_v14 = vshrl.u32 %v3700_v32, 16 }
  0x55   : > { %v461_v0 = vshll.u32 %v3705_v46, 16  ;;  %v3719_v20 = vpack.c.b16 %v688_v60, %v687_v53  ;;  %v339_v21 = vrot.slane %v338_v63, 4  ;;  %v447_v22 = vrot.slane %v445_v54, 5 }
  0x56   : > { %v453_v27 = vrot.slane %v451_v5, 5  ;;  %v334_v31 = vsel %vm3501_vm3, %v329_v6, %v333_v41  ;;  %v457_v33 = vrot.slane %v455_v14, 4  ;;  %v538_v55 = vshrl.u32 %v3715_v7, 16 }
  0x57   : > { %4861 = vst [vmem:[#allocation13_spill] sm:$0xff] %v3719_v20  ;;  %v463_v42 = vrot.slane %v461_v0, 5  ;;  %2842 = vmatmul.msk.bf16.gmra.mxu3 %vm707_vm4, %v3719_v20  ;;  %v344_v53 = vsel %vm3501_vm3, %v339_v21, %v343_v45  ;;  %v663_v59 = vunpack.c.l.b16 %v334_v31  ;;  %v448_v60 = vor.u32 %v447_v22, %v444_v13  ;;  %v3744_v22 = vld [vmem:[%s3474_s19 + $0xb8] sm:$0xf] }
  0x58   : > { %v541_v63 = vshll.u32 %v3715_v7, 16  ;;  %v664_v54 = vunpack.c.l.b16 %v344_v53  ;;  %v458_v41 = vor.u32 %v457_v33, %v453_v27  ;;  %v540_v5 = vrot.slane %v538_v55, 4  ;;  %4863 = vst [vmem:[#allocation15_spill] sm:$0xff] %v3744_v22 }
  0x59   : > { %v547_v6 = vshll.u32 %v3722_v30, 16  ;;  %v449_v14 = vrot.slane %v448_v60, 4  ;;  %v551_v8 = vshrl.u32 %v3722_v30, 16  ;;  %v557_v20 = vshll.u32 %v3727_v49, 16  ;;  %v3749_v60 = vld [vmem:[%s3474_s19 + $0xbc] sm:$0x1] }
  0x5a   : > { %v543_v0 = vrot.slane %v541_v63, 5  ;;  %v3741_v45 = vpack.c.b16 %v664_v54, %v663_v59  ;;  %v459_v21 = vrot.slane %v458_v41, 4  ;;  %4864 = vst [vmem:[#allocation16_spill] sm:$0xff] %v3749_v60  ;;  %v634_v54 = vshrl.u32 %v3739_v17, 16 }
  0x5b   : > { %v549_v13 = vrot.slane %v547_v6, 5  ;;  %v454_v31 = vsel %vm3501_vm3, %v449_v14, %v453_v27  ;;  %v553_v55 = vrot.slane %v551_v8, 4  ;;  %v559_v53 = vrot.slane %v557_v20, 5 }
  0x5c   : > { %v544_v33 = vor.u32 %v543_v0, %v540_v5  ;;  %2830 = vmatmul.msk.bf16.gmra.mxu0 %vm707_vm4, %v3741_v45  ;;  %v464_v59 = vsel %vm3501_vm3, %v459_v21, %v463_v42  ;;  %v673_v63 = vunpack.c.l.b16 %v454_v31  ;;  %v637_v41 = vshll.u32 %v3739_v17, 16 }
  0x5d   : > { %v674_v6 = vunpack.c.l.b16 %v464_v59  ;;  %v554_v5 = vor.u32 %v553_v55, %v549_v13  ;;  %v643_v8 = vshll.u32 %v3744_v22, 16  ;;  %v636_v20 = vrot.slane %v634_v54, 4 }
  0x5e   : > { %v545_v27 = vrot.slane %v544_v33, 4  ;;  %v639_v14 = vrot.slane %v637_v41, 5  ;;  %v647_v0 = vshrl.u32 %v3744_v22, 16  ;;  %v653_v16 = vshll.u32 %v3749_v60, 16  ;;  %v3768_v33 = vld [vmem:[%s3474_s19 + $0x28] sm:$0xf] }
  0x5f   : > { %v3763_v42 = vpack.c.b16 %v674_v6, %v673_v63  ;;  %v555_v31 = vrot.slane %v554_v5, 4  ;;  %v645_v59 = vrot.slane %v643_v8, 5  ;;  %v1093_v55 = vrot.slane %v3521_v2, 5 }
  0x60   : > { %v550_v21 = vsel %vm3501_vm3, %v545_v27, %v549_v13  ;;  %v640_v54 = vor.u32 %v639_v14, %v636_v20  ;;  %v649_v41 = vrot.slane %v647_v0, 4  ;;  %v655_v6 = vrot.slane %v653_v16, 5 }
  0x61   : > { %4865 = vst [vmem:[#allocation17_spill] sm:$0xff] %v3763_v42  ;;  %v681_v17 = vunpack.c.l.b16 %v550_v21  ;;  %2835 = vmatmul.msk.bf16.gmra.mxu1 %vm707_vm4, %v3763_v42  ;;  %v560_v63 = vsel %vm3501_vm3, %v555_v31, %v559_v53  ;;  %v346_v13 = vshrl.u32 %v3761_v40, 16  ;;  %v349_v27 = vshll.u32 %v3761_v40, 16 }
  0x62   : > { %v682_v5 = vunpack.c.l.b16 %v560_v63  ;;  %v641_v8 = vrot.slane %v640_v54, 4  ;;  %v650_v60 = vor.u32 %v649_v41, %v645_v59  ;;  %v355_v2 = vshll.u32 %v3768_v33, 16  ;;  %v3013_v54 = vld [vmem:[%s4806_s1 + $0xc] sm:$0x3]  ;;  %v3034_v41 = vld [vmem:[%s4806_s1 + $0xe] sm:$0x3] }
  0x63   : > { %v348_v20 = vrot.slane %v346_v13, 4  ;;  %v351_v14 = vrot.slane %v349_v27, 5  ;;  %v359_v0 = vshrl.u32 %v3768_v33, 16  ;;  %v365_v21 = vshll.u32 %v3772_v39, 16 }
  0x64   : > { %v3783_v22 = vpack.c.b16 %v682_v5, %v681_v17  ;;  %v646_v16 = vsel %vm3501_vm3, %v641_v8, %v645_v59  ;;  %v651_v53 = vrot.slane %v650_v60, 4  ;;  %v357_v31 = vrot.slane %v355_v2, 5  ;;  %v2996_v17 = vld [vmem:[%s4806_s1 + $0xa] sm:$0x3]  ;;  %v3052_v60 = vld [vmem:[%s4806_s1 + $0x10] sm:$0x3] }
  0x65   : > { %v689_v63 = vunpack.c.l.b16 %v646_v16  ;;  %v352_v13 = vor.u32 %v351_v14, %v348_v20  ;;  %v361_v27 = vrot.slane %v359_v0, 4  ;;  %v367_v7 = vrot.slane %v365_v21, 5 }
  0x66   : > { %4866 = vst [vmem:[#allocation18_spill] sm:$0xff] %v3783_v22  ;;  %2839 = vmatmul.msk.bf16.gmra.mxu2 %vm707_vm4, %v3783_v22  ;;  %v656_v59 = vsel %vm3501_vm3, %v651_v53, %v655_v6  ;;  %v2924_v5 = vrot.slane %v3511_v61, 9  ;;  %v1090_v0 = vrot.slane %v3518_v1, 5  ;;  %v1863_v21 = vsel %vm756_vm0, %v3013_v54, 0 }
  0x67   : > { %v690_v8 = vunpack.c.l.b16 %v656_v59  ;;  %v353_v2 = vrot.slane %v352_v13, 4  ;;  %v362_v20 = vor.u32 %v361_v27, %v357_v31  ;;  %v2019_v16 = vsel %vm756_vm0, %v3034_v41, 0  ;;  %1872 = vmatpush.bf16.msra.mxu2 %v1863_v21  ;;  %v3075_v21 = vld [vmem:[%s3474_s19 + $0xc] sm:$0xff] }
  0x68   : > { %v1729_v22 = vsel %vm756_vm0, %v2996_v17, 0  ;;  %v2159_v6 = vsel %vm756_vm0, %v3052_v60, 0  ;;  %v1091_v27 = vsel %vm3804_vm7, %v2924_v5, %v1090_v0  ;;  %2028 = vmatpush.bf16.msra.mxu3 %v2019_v16  ;;  %v1092_v54 = vrot.slane %v1090_v0, 4 }
  0x69   : > { %v3813_v53 = vpack.c.b16 %v690_v8, %v689_v63  ;;  %v358_v61 = vsel %vm3501_vm3, %v353_v2, %v357_v31  ;;  %v363_v13 = vrot.slane %v362_v20, 4  ;;  %1738 = vmatpush.bf16.msra.mxu1 %v1729_v22  ;;  %2168 = vmatpush.bf16.msra.mxu0 %v2159_v6  ;;  %v2925_v41 = vrot.slane %v3585_v35, 9  ;;  %v3074_v22 = vld [vmem:[%s3474_s19] sm:$0xff]  ;;  %v3850_v6 = vld [vmem:[%s3474_s19 + $0x18] sm:$0xff] }
  0x6a   : > { %v665_v1 = vunpack.c.l.b16 %v358_v61  ;;  %v1202_v31 = vunpack.c.l.b16 %v1091_v27  ;;  %v1097_v17 = vrot.slane %v3592_v43, 5  ;;  %v1100_v60 = vrot.slane %v3595_v48, 5 }
  0x6b   : > { %2843 = vmatmul.msk.bf16.gmra.mxu3 %vm707_vm4, %v3813_v53  ;;  %v368_v63 = vsel %vm3501_vm3, %v363_v13, %v367_v7  ;;  %v1094_v5 = vsel %vm3804_vm7, %v1092_v54, %v1093_v55  ;;  %v1104_v16 = vrot.slane %v3680_v56, 5  ;;  %v2926_v61 = vrot.slane %v3675_v52, 9 }
  0x6c   : > { %v666_v59 = vunpack.c.l.b16 %v368_v63  ;;  %v1203_v8 = vunpack.c.l.b16 %v1094_v5  ;;  %v1098_v35 = vsel %vm3804_vm7, %v2925_v41, %v1097_v17  ;;  %v1099_v2 = vrot.slane %v1097_v17, 4  ;;  %v3870_v41 = vld [vmem:[%s3474_s19 + $0x24] sm:$0xff] }
  0x6d   : > { %v1204_v7 = vunpack.c.l.b16 %v1098_v35  ;;  %v1106_v13 = vrot.slane %v1104_v16, 4  ;;  %v1107_v27 = vrot.slane %v3683_v57, 5  ;;  %v1111_v57 = vrot.slane %v3768_v33, 5 }
  0x6e   : > { %v3831_v20 = vpack.c.b16 %v666_v59, %v665_v1  ;;  %v1234_v0 = vpack.c.b16 %v1203_v8, %v1202_v31  ;;  %v1101_v43 = vsel %vm3804_vm7, %v1099_v2, %v1100_v60  ;;  %v2927_v63 = vrot.slane %v3761_v40, 9  ;;  %v3892_v8 = vld [vmem:[%s3474_s19 + $0x30] sm:$0xff] }
  0x6f   : > { %v1205_v48 = vunpack.c.l.b16 %v1101_v43  ;;  %v1108_v56 = vsel %vm3804_vm7, %v1106_v13, %v1107_v27  ;;  %v1113_v31 = vrot.slane %v1111_v57, 4  ;;  %v1114_v17 = vrot.slane %v3772_v39, 5  ;;  %v3920_v27 = vld [vmem:[%s3474_s19 + $0x3c] sm:$0xff] }
  0x70   : > { %2831 = vmatmul.msk.bf16.gmra.mxu0 %vm707_vm4, %v3831_v20  ;;  %v1207_v54 = vunpack.c.l.b16 %v1108_v56  ;;  %v1112_v60 = vsel %vm3804_vm7, %v2927_v63, %v1111_v57  ;;  %v1118_v39 = vrot.slane %v3480_v11, 5  ;;  %v2928_v35 = vrot.slane %v3477_v10, 9 }
  0x71   : > { %2908 = vmatmul.msk.bf16.vlgmr.msrb.gmra.mxu1 %vm707_vm4, %v3074_v22  ;;  %v3838_v55 = vpack.c.b16 %v1205_v48, %v1204_v7  ;;  %v1115_v33 = vsel %vm3804_vm7, %v1113_v31, %v1114_v17  ;;  %v1208_v59 = vunpack.c.l.b16 %v1112_v60  ;;  %v1121_v7 = vrot.slane %v3483_v12, 5 }
  0x72   : > { %v1209_v5 = vunpack.c.l.b16 %v1115_v33  ;;  %v1120_v2 = vrot.slane %v1118_v39, 4  ;;  %v1125_v13 = vrot.slane %v3540_v24, 5  ;;  %v2929_v56 = vrot.slane %v3537_v23, 9 }
  0x74   : > { %v3884_v40 = vpack.c.b16 %v1209_v5, %v1208_v59  ;;  %v1122_v11 = vsel %vm3804_vm7, %v1120_v2, %v1121_v7  ;;  %v1126_v24 = vsel %vm3804_vm7, %v2929_v56, %v1125_v13  ;;  %v1132_v5 = vrot.slane %v3610_v3, 5 }
  0x75   : > { %v1212_v23 = vunpack.c.l.b16 %v1126_v24  ;;  %v2930_v7 = vrot.slane %v3605_v58, 9  ;;  %v1139_v24 = vrot.slane %v3700_v32, 5 }
  0x76   : > { %2941 = vmatmul.msk.bf16.vlgmr.msrb.gmra.mxu2 %vm707_vm4, %v1234_v0  ;;  %v1119_v0 = vsel %vm3804_vm7, %v2928_v35, %v1118_v39  ;;  %v3954_v35 = vld [vmem:[%s3474_s19 + $0x48] sm:$0xff] }
  0x77   : > { %v1210_v48 = vunpack.c.l.b16 %v1119_v0  ;;  %4871 = vst [vmem:[#allocation21_spill] sm:$0xff] %v3954_v35  ;;  %v1134_v0 = vrot.slane %v1132_v5, 4 }
  0x7b   : > { %2962 = vmatmul.msk.bf16.vlgmr.msrb.gmra.mxu3 %vm707_vm4, %v3075_v21 }
  0x80   : > { %2979 = vmatmul.msk.bf16.vlgmr.msrb.gmra.mxu0 %vm707_vm4, %v3653_v9  ;;  %v1105_v9 = vsel %vm3804_vm7, %v2926_v61, %v1104_v16 }
  0x81   : > { %2909 = vmatmul.msk.bf16.gmra.mxu1 %vm707_vm4, %v3075_v21  ;;  %v1206_v1 = vunpack.c.l.b16 %v1105_v9  ;;  %v1211_v21 = vunpack.c.l.b16 %v1122_v11  ;;  %v1135_v11 = vrot.slane %v3617_v15, 5 }
  0x83   : > { %v3864_v52 = vpack.c.b16 %v1207_v54, %v1206_v1  ;;  %v3912_v12 = vpack.c.b16 %v1211_v21, %v1210_v48  ;;  %v1127_v1 = vrot.slane %v1125_v13, 4  ;;  %v1128_v54 = vrot.slane %v3545_v29, 5 }
  0x84   : > { %v1133_v21 = vsel %vm3804_vm7, %v2930_v7, %v1132_v5  ;;  %v1136_v13 = vsel %vm3804_vm7, %v1134_v0, %v1135_v11  ;;  %v2931_v5 = vrot.slane %v3695_v26, 9  ;;  %v1141_v7 = vrot.slane %v1139_v24, 4 }
  0x85   : > { %v1129_v63 = vsel %vm3804_vm7, %v1127_v1, %v1128_v54  ;;  %v1214_v56 = vunpack.c.l.b16 %v1133_v21  ;;  %v1215_v1 = vunpack.c.l.b16 %v1136_v13  ;;  %v1142_v0 = vrot.slane %v3705_v46, 5 }
  0x86   : > { %2942 = vmatmul.msk.bf16.gmra.mxu2 %vm707_vm4, %v3838_v55  ;;  %v1213_v60 = vunpack.c.l.b16 %v1129_v63  ;;  %v1140_v32 = vsel %vm3804_vm7, %v2931_v5, %v1139_v24  ;;  %v1146_v5 = vrot.slane %v3492_v19, 5 }
  0x87   : > { %v3978_v54 = vpack.c.b16 %v1215_v1, %v1214_v56  ;;  %v1143_v13 = vsel %vm3804_vm7, %v1141_v7, %v1142_v0  ;;  %v1216_v56 = vunpack.c.l.b16 %v1140_v32  ;;  %v3283_v32 = vld [vmem:[%s3474_s19 + $0x68] sm:$0x1] }
  0x88   : > { %v3944_v33 = vpack.c.b16 %v1213_v60, %v1212_v23  ;;  %v3988_v60 = vld [vmem:[%s3474_s19 + $0x54] sm:$0xff]  ;;  %v1217_v46 = vunpack.c.l.b16 %v1143_v13  ;;  %v1149_v13 = vrot.slane %v3283_v32, 5 }
  0x89   : > { %4874 = vst [vmem:[#allocation24_spill] sm:$0xff] %v3978_v54 }
  0x8a   : > { %4875 = vst [vmem:[#allocation25_spill] sm:$0xff] %v3988_v60 }
  0x8b   : > { %2963 = vmatmul.msk.bf16.gmra.mxu3 %vm707_vm4, %v3850_v6 }
  0x90   : > { %2980 = vmatmul.msk.bf16.gmra.mxu0 %vm707_vm4, %v3741_v45 }
  0x91   : > { %2910 = vmatmul.msk.bf16.gmra.mxu1 %vm707_vm4, %v3850_v6 }
  0x96   : > { %2943 = vmatmul.msk.bf16.gmra.mxu2 %vm707_vm4, %v3864_v52 }
  0x9b   : > { %2964 = vmatmul.msk.bf16.gmra.mxu3 %vm707_vm4, %v3870_v41 }
  0xa0   : > { %2981 = vmatmul.msk.bf16.gmra.mxu0 %vm707_vm4, %v3831_v20 }
  0xa1   : > { %2911 = vmatmul.msk.bf16.gmra.mxu1 %vm707_vm4, %v3870_v41 }
  0xa6   : > { %v3887_v22 = vpop.f32.mrf.mxu1  ;;  %2944 = vmatmul.msk.bf16.gmra.mxu2 %vm707_vm4, %v3884_v40 }
  0xab   : > { %2965 = vmatmul.msk.bf16.gmra.mxu3 %vm707_vm4, %v3892_v8 }
  0xae   : > { %v3902_v43 = vpop.f32.mrf.mxu1 }
  0xb0   : > { %v3904_v16 = vpop.f32.mrf.mxu2  ;;  %2982 = vmatmul.msk.bf16.gmra.mxu0 %vm707_vm4, %v3513_v62 }
  0xb1   : > { %2912 = vmatmul.msk.bf16.gmra.mxu1 %vm707_vm4, %v3892_v8 }
  0xb3   : > { %v3910_v10 = vpop.f32.mrf.mxu0 }
  0xb4   : > { %v3914_v61 = vpop.f32.mrf.mxu3 }
  0xb5   : > { %4869 = vst [vmem:[#allocation19_spill] sm:$0xff] %v3914_v61 }
  0xb6   : > { %2945 = vmatmul.msk.bf16.gmra.mxu2 %vm707_vm4, %v3912_v12 }
  0xb8   : > { %v3922_v9 = vpop.f32.mrf.mxu1  ;;  %v3926_v57 = vpop.f32.mrf.mxu2 }
  0xbb   : > { %2966 = vmatmul.msk.bf16.gmra.mxu3 %vm707_vm4, %v3920_v27  ;;  %v3934_v31 = vpop.f32.mrf.mxu0 }
  0xbc   : > { %v3936_v17 = vpop.f32.mrf.mxu3 }
  0xbd   : > { %4870 = vst [vmem:[#allocation20_spill] sm:$0xff] %v3936_v17 }
  0xc0   : > { %2983 = vmatmul.msk.bf16.gmra.mxu0 %vm707_vm4, %v3587_v37  ;;  %v3940_v29 = vpop.f32.mrf.mxu1 }
  0xc1   : > { %2913 = vmatmul.msk.bf16.gmra.mxu1 %vm707_vm4, %v3920_v27 }
  0xc3   : > { %v3946_v59 = vpop.f32.mrf.mxu2 }
  0xc6   : > { %2946 = vmatmul.msk.bf16.gmra.mxu2 %vm707_vm4, %v3944_v33 }
  0xc7   : > { %v3949_v39 = vpop.f32.mrf.mxu0 }
  0xc8   : > { %v3956_v2 = vpop.f32.mrf.mxu3 }
  0xc9   : > { %4872 = vst [vmem:[#allocation22_spill] sm:$0xff] %v3956_v2 }
  0xca   : > { %v3960_v48 = vpop.f32.mrf.mxu1 }
  0xcb   : > { %2967 = vmatmul.msk.bf16.gmra.mxu3 %vm707_vm4, %v3954_v35  ;;  %v3964_v3 = vpop.f32.mrf.mxu2 }
  0xcf   : > { %v3970_v58 = vpop.f32.mrf.mxu0 }
  0xd0   : > { %2984 = vmatmul.msk.bf16.gmra.mxu0 %vm707_vm4, %v3672_v44  ;;  %v3974_v15 = vpop.f32.mrf.mxu3 }
  0xd1   : > { %4873 = vst [vmem:[#allocation23_spill] sm:$0xff] %v3974_v15  ;;  %2914 = vmatmul.msk.bf16.gmra.mxu1 %vm707_vm4, %v3954_v35  ;;  %v4023_v15 = vld [vmem:[%s3474_s19 + $0x60] sm:$0xff] }
  0xd2   : > { %v3981_v63 = vpop.f32.mrf.mxu1  ;;  %4879 = vst [vmem:[#allocation29_spill] sm:$0xff] %v4023_v15 }
  0xd6   : > { %v3983_v23 = vpop.f32.mrf.mxu2  ;;  %2947 = vmatmul.msk.bf16.gmra.mxu2 %vm707_vm4, %v3978_v54 }
  0xd9   : > { %v3992_v11 = vpop.f32.mrf.mxu0 }
  0xda   : > { %v3994_v21 = vpop.f32.mrf.mxu3 }
  0xdb   : > { %4876 = vst [vmem:[#allocation26_spill] sm:$0xff] %v3994_v21  ;;  %2968 = vmatmul.msk.bf16.gmra.mxu3 %vm707_vm4, %v3988_v60  ;;  %v4010_v21 = vpack.c.b16 %v1217_v46, %v1216_v56 }
  0xdd   : > { %4877 = vst [vmem:[#allocation27_spill] sm:$0xff] %v4010_v21 }
  0xde   : > { %v4002_v26 = vpop.f32.mrf.mxu1  ;;  %v4004_v1 = vpop.f32.mrf.mxu2 }
  0xe0   : > { %2985 = vmatmul.msk.bf16.gmra.mxu0 %vm707_vm4, %v3763_v42  ;;  %v3284_v42 = vld [vmem:[%s3474_s19 + $0x60] sm:$0xf] }
  0xe1   : > { %2915 = vmatmul.msk.bf16.gmra.mxu1 %vm707_vm4, %v3988_v60  ;;  %v4012_v24 = vpop.f32.mrf.mxu0  ;;  %v2932_v2 = vrot.slane %v3284_v42, 9  ;;  %v1148_v60 = vrot.slane %v1146_v5, 4 }
  0xe2   : > { %v4015_v7 = vpop.f32.mrf.mxu3 }
  0xe3   : > { %4878 = vst [vmem:[#allocation28_spill] sm:$0xff] %v4015_v7  ;;  %v1147_v19 = vsel %vm3804_vm7, %v2932_v2, %v1146_v5  ;;  %v1150_v46 = vsel %vm3804_vm7, %v1148_v60, %v1149_v13  ;;  %v1153_v60 = vrot.slane %v3560_v47, 5 }
  0xe4   : > { %v1218_v17 = vunpack.c.l.b16 %v1147_v19  ;;  %v1219_v42 = vunpack.c.l.b16 %v1150_v46  ;;  %v4056_v19 = vld [vmem:[%s3474_s19 + $0x6c] sm:$0xff] }
  0xe6   : > { %2948 = vmatmul.msk.bf16.gmra.mxu2 %vm707_vm4, %v4010_v21  ;;  %v4019_v0 = vpop.f32.mrf.mxu1  ;;  %v4045_v2 = vpack.c.b16 %v1219_v42, %v1218_v17  ;;  %v1155_v17 = vrot.slane %v1153_v60, 4 }
  0xe8   : > { %4881 = vst [vmem:[#allocation31_spill] sm:$0xff] %v4045_v2 }
  0xe9   : > { %v4026_v56 = vpop.f32.mrf.mxu2 }
  0xeb   : > { %2969 = vmatmul.msk.bf16.gmra.mxu3 %vm707_vm4, %v4023_v15 }
  0xed   : > { %v4034_v7 = vpop.f32.mrf.mxu0 }
  0xee   : > { %v4036_v32 = vpop.f32.mrf.mxu3  ;;  %v989_v21 = vpop.f32.mrf.mxu1 }
  0xef   : > { %4880 = vst [vmem:[#allocation30_spill] sm:$0xff] %v4036_v32  ;;  %v990_v54 = vadd.f32 %v989_v21, %v3910_v10  ;;  %v1156_v21 = vrot.slane %v3567_v51, 5  ;;  %v2933_v32 = vrot.slane %v3553_v38, 9 }
  0xf0   : > { %2986 = vmatmul.msk.bf16.gmra.mxu0 %vm707_vm4, %v3532_v18 }
  0xf1   : > { %v4041_v44 = vpop.f32.mrf.mxu2  ;;  %2916 = vmatmul.msk.bf16.gmra.mxu1 %vm707_vm4, %v4023_v15  ;;  %v1154_v47 = vsel %vm3804_vm7, %v2933_v32, %v1153_v60 }
  0xf2   : > { %v1220_v61 = vunpack.c.l.b16 %v1154_v47 }
  0xf5   : > { %v4048_v5 = vpop.f32.mrf.mxu0 }
  0xf6   : > { %v4050_v13 = vpop.f32.mrf.mxu3  ;;  %2949 = vmatmul.msk.bf16.gmra.mxu2 %vm707_vm4, %v4045_v2  ;;  %v991_v10 = vpop.f32.mrf.mxu1 }
  0xf7   : > { %4882 = vst [vmem:[#allocation32_spill] sm:$0xff] %v4050_v13  ;;  %v992_v46 = vadd.f32 %v991_v10, %v3934_v31  ;;  %v1157_v13 = vsel %vm3804_vm7, %v1155_v17, %v1156_v21  ;;  %v1160_v21 = vrot.slane %v3632_v34, 5 }
  0xf8   : > { %v1221_v35 = vunpack.c.l.b16 %v1157_v13  ;;  %v1163_v13 = vrot.slane %v3639_v50, 5 }
  0xf9   : > { %v1310_v42 = vpop.f32.mrf.mxu2 }
  0xfa   : > { %v1390_v18 = vadd.f32 %v1310_v42, %v990_v54  ;;  %v4073_v10 = vpack.c.b16 %v1221_v35, %v1220_v61  ;;  %v4080_v42 = vld [vmem:[%s3474_s19 + $0x78] sm:$0xff] }
  0xfb   : > { %2970 = vmatmul.msk.bf16.gmra.mxu3 %vm707_vm4, %v4056_v19 }
  0xfd   : > { %v1600_v2 = vpop.f32.mrf.mxu0 }
  0xfe   : > { %v1444_v51 = vpop.f32.mrf.mxu3  ;;  %v994_v15 = vpop.f32.mrf.mxu1 }
  0xff   : > { %v1524_v31 = vadd.f32 %v1444_v51, %v1390_v18  ;;  %v995_v38 = vadd.f32 %v994_v15, %v3949_v39 }
 0x100   : > { %2987 = vmatmul.msk.bf16.gmra.mxu0 %vm707_vm4, %v3612_v4 }
 0x101   : > { %v1312_v54 = vpop.f32.mrf.mxu2  ;;  %2917 = vmatmul.msk.bf16.gmra.mxu1 %vm707_vm4, %v4056_v19  ;;  %v4071_v32 = vadd.f32 %v1600_v2, %v1524_v31  ;;  %v2934_v2 = vrot.slane %v3628_v28, 9 }
 0x102   : > { %v1391_v60 = vadd.f32 %v1312_v54, %v992_v46  ;;  %v1162_v46 = vrot.slane %v1160_v21, 4 }
 0x103   : > { %v1161_v50 = vsel %vm3804_vm7, %v2934_v2, %v1160_v21 }
 0x104   : > { %v1164_v51 = vsel %vm3804_vm7, %v1162_v46, %v1163_v13  ;;  %v1170_v46 = vrot.slane %v3727_v49, 5 }
 0x105   : > { %v1602_v17 = vpop.f32.mrf.mxu0 }
 0x106   : > { %v1446_v18 = vpop.f32.mrf.mxu3  ;;  %2950 = vmatmul.msk.bf16.gmra.mxu2 %vm707_vm4, %v4073_v10  ;;  %v996_v39 = vpop.f32.mrf.mxu1 }
 0x107   : > { %v1525_v15 = vadd.f32 %v1446_v18, %v1391_v60  ;;  %v997_v47 = vadd.f32 %v996_v39, %v3970_v58  ;;  %v1222_v58 = vunpack.c.l.b16 %v1161_v50  ;;  %v1223_v18 = vunpack.c.l.b16 %v1164_v51  ;;  %v4106_v50 = vld [vmem:[%s3474_s19 + $0x84] sm:$0xff] }
 0x109   : > { %v1315_v61 = vpop.f32.mrf.mxu2  ;;  %v4084_v35 = vadd.f32 %v1602_v17, %v1525_v15  ;;  %v4099_v13 = vpack.c.b16 %v1223_v18, %v1222_v58  ;;  %v1167_v15 = vrot.slane %v3722_v30, 5 }
 0x10a   : > { %v1392_v34 = vadd.f32 %v1315_v61, %v995_v38 }
 0x10b   : > { %2971 = vmatmul.msk.bf16.gmra.mxu3 %vm707_vm4, %v4080_v42 }
 0x10d   : > { %v1605_v31 = vpop.f32.mrf.mxu0 }
 0x10e   : > { %v1449_v54 = vpop.f32.mrf.mxu3  ;;  %v999_v60 = vpop.f32.mrf.mxu1 }
 0x10f   : > { %v1526_v28 = vadd.f32 %v1449_v54, %v1392_v34  ;;  %v1000_v17 = vadd.f32 %v999_v60, %v3992_v11 }
 0x110   : > { %2988 = vmatmul.msk.bf16.gmra.mxu0 %vm707_vm4, %v3697_v25 }
 0x111   : > { %v1317_v38 = vpop.f32.mrf.mxu2  ;;  %2918 = vmatmul.msk.bf16.gmra.mxu1 %vm707_vm4, %v4080_v42  ;;  %v4097_v21 = vadd.f32 %v1605_v31, %v1526_v28  ;;  %v4883_v31 = vld [vmem:[#allocation12_spill] sm:$0xff] }
 0x112   : > { %v1393_v39 = vadd.f32 %v1317_v38, %v997_v47  ;;  %v2935_v54 = vrot.slane %v4883_v31, 9  ;;  %v1169_v47 = vrot.slane %v1167_v15, 4 }
 0x114   : > { %v1168_v49 = vsel %vm3804_vm7, %v2935_v54, %v1167_v15  ;;  %v1171_v18 = vsel %vm3804_vm7, %v1169_v47, %v1170_v46  ;;  %v3285_v54 = vld [vmem:[%s3474_s19 + $0x94] sm:$0xf] }
 0x115   : > { %v1607_v2 = vpop.f32.mrf.mxu0  ;;  %v1174_v47 = vrot.slane %v3285_v54, 5 }
 0x116   : > { %v1451_v61 = vpop.f32.mrf.mxu3  ;;  %2951 = vmatmul.msk.bf16.gmra.mxu2 %vm707_vm4, %v4099_v13  ;;  %v1001_v11 = vpop.f32.mrf.mxu1 }
 0x117   : > { %v1527_v34 = vadd.f32 %v1451_v61, %v1393_v39  ;;  %v1002_v51 = vadd.f32 %v1001_v11, %v4012_v24  ;;  %v1224_v39 = vunpack.c.l.b16 %v1168_v49  ;;  %v1225_v61 = vunpack.c.l.b16 %v1171_v18 }
 0x119   : > { %v1320_v60 = vpop.f32.mrf.mxu2  ;;  %v4110_v58 = vadd.f32 %v1607_v2, %v1527_v34  ;;  %v4125_v31 = vpack.c.b16 %v1225_v61, %v1224_v39 }
 0x11a   : > { %v1394_v30 = vadd.f32 %v1320_v60, %v1000_v17  ;;  %v4885_v17 = vld [vmem:[#allocation18_spill] sm:$0xff] }
 0x11b   : > { %4884 = vst [vmem:[#allocation12_spill] sm:$0xff] %v4110_v58  ;;  %2972 = vmatmul.msk.bf16.gmra.mxu3 %vm707_vm4, %v4106_v50 }
 0x11c   : > { %4887 = vst [vmem:[#allocation34_spill] sm:$0xff] %v4125_v31 }
 0x11d   : > { %v1610_v28 = vpop.f32.mrf.mxu0 }
 0x11e   : > { %v1454_v24 = vpop.f32.mrf.mxu3  ;;  %v1004_v38 = vpop.f32.mrf.mxu1 }
 0x11f   : > { %v1528_v11 = vadd.f32 %v1454_v24, %v1394_v30  ;;  %v1005_v2 = vadd.f32 %v1004_v38, %v4034_v7  ;;  %v3286_v30 = vld [vmem:[%s3474_s19 + $0x98] sm:$0x1]  ;;  %v4132_v38 = vld [vmem:[%s3474_s19 + $0x90] sm:$0xff] }
 0x120   : > { %2989 = vmatmul.msk.bf16.gmra.mxu0 %vm707_vm4, %v4885_v17  ;;  %v1177_v49 = vrot.slane %v3286_v30, 5  ;;  %4888 = vst [vmem:[#allocation35_spill] sm:$0xff] %v4132_v38 }
 0x121   : > { %v1322_v34 = vpop.f32.mrf.mxu2  ;;  %2919 = vmatmul.msk.bf16.gmra.mxu1 %vm707_vm4, %v4106_v50  ;;  %v4123_v15 = vadd.f32 %v1610_v28, %v1528_v11  ;;  %v3287_v28 = vld [vmem:[%s3474_s19 + $0x90] sm:$0xf] }
 0x122   : > { %v1395_v46 = vadd.f32 %v1322_v34, %v1002_v51  ;;  %v2936_v11 = vrot.slane %v3287_v28, 9  ;;  %v1176_v51 = vrot.slane %v1174_v47, 4 }
 0x123   : > { %4886 = vst [vmem:[#allocation33_spill] sm:$0xff] %v4123_v15 }
 0x124   : > { %v1175_v54 = vsel %vm3804_vm7, %v2936_v11, %v1174_v47  ;;  %v3288_v11 = vld [vmem:[%s3474_s19 + $0xa0] sm:$0xf] }
 0x125   : > { %v1612_v60 = vpop.f32.mrf.mxu0 }
 0x126   : > { %v1456_v7 = vpop.f32.mrf.mxu3  ;;  %2952 = vmatmul.msk.bf16.gmra.mxu2 %vm707_vm4, %v4125_v31  ;;  %v1006_v18 = vpop.f32.mrf.mxu1  ;;  %v3290_v31 = vld [vmem:[%s3474_s19 + $0x9c] sm:$0xf] }
 0x127   : > { %v1529_v24 = vadd.f32 %v1456_v7, %v1395_v46  ;;  %v1007_v58 = vadd.f32 %v1006_v18, %v4048_v5  ;;  %v1178_v46 = vsel %vm3804_vm7, %v1176_v51, %v1177_v49  ;;  %v1226_v18 = vunpack.c.l.b16 %v1175_v54 }
 0x128   : > { %v1227_v28 = vunpack.c.l.b16 %v1178_v46  ;;  %v1181_v51 = vrot.slane %v3288_v11, 5  ;;  %v3289_v46 = vld [vmem:[%s3474_s19 + $0xa4] sm:$0x1] }
 0x129   : > { %v1325_v39 = vpop.f32.mrf.mxu2  ;;  %v4136_v61 = vadd.f32 %v1612_v60, %v1529_v24  ;;  %v4890_v60 = vld [vmem:[#allocation6_spill] sm:$0xff] }
 0x12a   : > { %v1396_v34 = vadd.f32 %v1325_v39, %v1005_v2  ;;  %v4150_v49 = vpack.c.b16 %v1227_v28, %v1226_v18 }
 0x12b   : > { %4889 = vst [vmem:[#allocation36_spill] sm:$0xff] %v4136_v61  ;;  %2973 = vmatmul.msk.bf16.gmra.mxu3 %vm707_vm4, %v4132_v38 }
 0x12c   : > { %4892 = vst [vmem:[#allocation38_spill] sm:$0xff] %v4150_v49 }
 0x12d   : > { %v1615_v30 = vpop.f32.mrf.mxu0 }
 0x12e   : > { %v1459_v7 = vpop.f32.mrf.mxu3  ;;  %v1009_v5 = vpop.f32.mrf.mxu1 }
 0x12f   : > { %v1530_v15 = vadd.f32 %v1459_v7, %v1396_v34  ;;  %v1184_v7 = vrot.slane %v3289_v46, 5 }
 0x130   : > { %2990 = vmatmul.msk.bf16.gmra.mxu0 %vm707_vm4, %v4890_v60  ;;  %v4157_v60 = vld [vmem:[%s3474_s19 + $0x9c] sm:$0xff] }
 0x131   : > { %v1327_v2 = vpop.f32.mrf.mxu2  ;;  %2920 = vmatmul.msk.bf16.gmra.mxu1 %vm707_vm4, %v4132_v38  ;;  %v4148_v47 = vadd.f32 %v1615_v30, %v1530_v15  ;;  %4893 = vst [vmem:[#allocation39_spill] sm:$0xff] %v4157_v60  ;;  %v2937_v38 = vrot.slane %v3290_v31, 9  ;;  %v1183_v15 = vrot.slane %v1181_v51, 4 }
 0x132   : > { %v1397_v24 = vadd.f32 %v1327_v2, %v1007_v58  ;;  %v1010_v58 = vadd.f32 %v1009_v5, %v3887_v22  ;;  %v4895_v5 = vld [vmem:[#allocation7_spill] sm:$0xff] }
 0x133   : > { %4891 = vst [vmem:[#allocation37_spill] sm:$0xff] %v4148_v47  ;;  %v1182_v2 = vsel %vm3804_vm7, %v2937_v38, %v1181_v51 }
 0x134   : > { %v1228_v31 = vunpack.c.l.b16 %v1182_v2 }
 0x135   : > { %v1617_v39 = vpop.f32.mrf.mxu0 }
 0x136   : > { %v1461_v54 = vpop.f32.mrf.mxu3  ;;  %2953 = vmatmul.msk.bf16.gmra.mxu2 %vm707_vm4, %v4150_v49  ;;  %v1011_v34 = vpop.f32.mrf.mxu1 }
 0x137   : > { %v1531_v61 = vadd.f32 %v1461_v54, %v1397_v24  ;;  %v1185_v24 = vsel %vm3804_vm7, %v1183_v15, %v1184_v7  ;;  %v4898_v15 = vld [vmem:[#allocation9_spill] sm:$0xff] }
 0x138   : > { %v1229_v47 = vunpack.c.l.b16 %v1185_v24  ;;  %v4899_v24 = vld [vmem:[#allocation10_spill] sm:$0xff] }
 0x139   : > { %v1330_v30 = vpop.f32.mrf.mxu2  ;;  %v4161_v18 = vadd.f32 %v1617_v39, %v1531_v61  ;;  %v1012_v61 = vadd.f32 %v1011_v34, %v3902_v43  ;;  %v4183_v34 = vld [vmem:[%s3474_s19 + $0xa8] sm:$0xff] }
 0x13a   : > { %v1398_v28 = vadd.f32 %v1330_v30, %v1010_v58  ;;  %v4176_v7 = vpack.c.b16 %v1229_v47, %v1228_v31  ;;  %v1188_v58 = vrot.slane %v4898_v15, 5  ;;  %4900 = vst [vmem:[#allocation9_spill] sm:$0xff] %v4183_v34 }
 0x13b   : > { %4894 = vst [vmem:[#allocation40_spill] sm:$0xff] %v4161_v18  ;;  %2974 = vmatmul.msk.bf16.gmra.mxu3 %vm707_vm4, %v4157_v60  ;;  %v4901_v18 = vld [vmem:[#allocation8_spill] sm:$0xff] }
 0x13c   : > { %4897 = vst [vmem:[#allocation42_spill] sm:$0xff] %v4176_v7 }
 0x13d   : > { %v1620_v11 = vpop.f32.mrf.mxu0 }
 0x13e   : > { %v1464_v54 = vpop.f32.mrf.mxu3  ;;  %v1014_v46 = vpop.f32.mrf.mxu1 }
 0x13f   : > { %v1532_v22 = vadd.f32 %v1464_v54, %v1398_v28  ;;  %v1191_v54 = vrot.slane %v4899_v24, 5 }
 0x140   : > { %2991 = vmatmul.msk.bf16.gmra.mxu0 %vm707_vm4, %v4895_v5  ;;  %v2938_v5 = vrot.slane %v4901_v18, 9 }
 0x141   : > { %v1332_v39 = vpop.f32.mrf.mxu2  ;;  %2921 = vmatmul.msk.bf16.gmra.mxu1 %vm707_vm4, %v4157_v60  ;;  %v4174_v38 = vadd.f32 %v1620_v11, %v1532_v22  ;;  %v1190_v11 = vrot.slane %v1188_v58, 4  ;;  %v1015_v22 = vadd.f32 %v1014_v46, %v3922_v9 }
 0x142   : > { %v1399_v51 = vadd.f32 %v1332_v39, %v1012_v61  ;;  %v1189_v39 = vsel %vm3804_vm7, %v2938_v5, %v1188_v58  ;;  %v4201_v5 = vld [vmem:[%s3474_s19 + $0xc0] sm:$0xf] }
 0x143   : > { %4896 = vst [vmem:[#allocation41_spill] sm:$0xff] %v4174_v38  ;;  %v1230_v24 = vunpack.c.l.b16 %v1189_v39  ;;  %v4903_v38 = vld [vmem:[#allocation13_spill] sm:$0xff]  ;;  %v1557_v39 = vshrl.u32 %v4201_v5, 16 }
 0x144   : > { %4904 = vst [vmem:[#allocation8_spill] sm:$0xff] %v4201_v5 }
 0x145   : > { %v1622_v30 = vpop.f32.mrf.mxu0 }
 0x146   : > { %v1466_v2 = vpop.f32.mrf.mxu3  ;;  %2954 = vmatmul.msk.bf16.gmra.mxu2 %vm707_vm4, %v4176_v7  ;;  %v1016_v28 = vpop.f32.mrf.mxu1 }
 0x147   : > { %v1533_v43 = vadd.f32 %v1466_v2, %v1399_v51  ;;  %v1192_v51 = vsel %vm3804_vm7, %v1190_v11, %v1191_v54 }
 0x148   : > { %v1231_v9 = vunpack.c.l.b16 %v1192_v51 }
 0x149   : > { %v1335_v47 = vpop.f32.mrf.mxu2  ;;  %v4187_v31 = vadd.f32 %v1622_v30, %v1533_v43  ;;  %v1017_v30 = vadd.f32 %v1016_v28, %v3940_v29  ;;  %v1560_v29 = vshll.u32 %v4201_v5, 16 }
 0x14a   : > { %v1400_v61 = vadd.f32 %v1335_v47, %v1015_v22  ;;  %v4205_v11 = vpack.c.b16 %v1231_v9, %v1230_v24  ;;  %v4208_v22 = vld [vmem:[%s3474_s19 + $0xc4] sm:$0xf]  ;;  %v4908_v47 = vld [vmem:[#allocation15_spill] sm:$0xff]  ;;  %v4909_v24 = vld [vmem:[#allocation16_spill] sm:$0xff] }
 0x14b   : > { %4902 = vst [vmem:[#allocation10_spill] sm:$0xff] %v4187_v31  ;;  %2975 = vmatmul.msk.bf16.gmra.mxu3 %vm707_vm4, %v4183_v34  ;;  %v1566_v28 = vshll.u32 %v4208_v22, 16  ;;  %v1198_v9 = vrot.slane %v4909_v24, 5  ;;  %v1562_v7 = vrot.slane %v1560_v29, 5 }
 0x14c   : > { %4906 = vst [vmem:[#allocation44_spill] sm:$0xff] %v4205_v11 }
 0x14d   : > { %v1625_v15 = vpop.f32.mrf.mxu0  ;;  %4907 = vst [vmem:[#allocation45_spill] sm:$0xff] %v4208_v22 }
 0x14e   : > { %v1469_v18 = vpop.f32.mrf.mxu3  ;;  %v1019_v2 = vpop.f32.mrf.mxu1 }
 0x14f   : > { %v1534_v46 = vadd.f32 %v1469_v18, %v1400_v61  ;;  %v1195_v61 = vrot.slane %v4908_v47, 5  ;;  %v1570_v18 = vshrl.u32 %v4208_v22, 16  ;;  %v1020_v5 = vadd.f32 %v1019_v2, %v3960_v48 }
 0x150   : > { %2992 = vmatmul.msk.bf16.gmra.mxu0 %vm707_vm4, %v4903_v38  ;;  %v1559_v38 = vrot.slane %v1557_v39, 4  ;;  %v1568_v22 = vrot.slane %v1566_v28, 5 }
 0x151   : > { %v1337_v43 = vpop.f32.mrf.mxu2  ;;  %2922 = vmatmul.msk.bf16.gmra.mxu1 %vm707_vm4, %v4183_v34  ;;  %v4203_v58 = vadd.f32 %v1625_v15, %v1534_v46  ;;  %v1572_v60 = vrot.slane %v1570_v18, 4 }
 0x152   : > { %v1401_v54 = vadd.f32 %v1337_v43, %v1017_v30  ;;  %v4219_v30 = vld [vmem:[%s3474_s19 + $0xb4] sm:$0xff]  ;;  %v4910_v43 = vld [vmem:[#allocation14_spill] sm:$0xff]  ;;  %v1563_v2 = vor.u32 %v1562_v7, %v1559_v38 }
 0x153   : > { %4905 = vst [vmem:[#allocation43_spill] sm:$0xff] %v4203_v58  ;;  %v2939_v47 = vrot.slane %v4910_v43, 9  ;;  %v1197_v58 = vrot.slane %v1195_v61, 4  ;;  %v1573_v39 = vor.u32 %v1572_v60, %v1568_v22 }
 0x155   : > { %v1627_v51 = vpop.f32.mrf.mxu0  ;;  %v1574_v38 = vrot.slane %v1573_v39, 4 }
 0x156   : > { %v1471_v31 = vpop.f32.mrf.mxu3  ;;  %2955 = vmatmul.msk.bf16.gmra.mxu2 %vm707_vm4, %v4205_v11  ;;  %v1021_v15 = vpop.f32.mrf.mxu1  ;;  %v4226_v11 = vld [vmem:[%s3474_s19 + $0xc8] sm:$0x1] }
 0x157   : > { %v1535_v46 = vadd.f32 %v1471_v31, %v1401_v54  ;;  %v1196_v31 = vsel %vm3804_vm7, %v2939_v47, %v1195_v61  ;;  %v1199_v54 = vsel %vm3804_vm7, %v1197_v58, %v1198_v9  ;;  %v1576_v29 = vshll.u32 %v4226_v11, 16 }
 0x158   : > { %v1232_v18 = vunpack.c.l.b16 %v1196_v31  ;;  %v1022_v24 = vadd.f32 %v1021_v15, %v3981_v63  ;;  %v1564_v58 = vrot.slane %v1563_v2, 4 }
 0x159   : > { %v1340_v34 = vpop.f32.mrf.mxu2  ;;  %v4223_v49 = vadd.f32 %v1627_v51, %v1535_v46  ;;  %v1578_v60 = vrot.slane %v1576_v29, 5 }
 0x15a   : > { %v1402_v17 = vadd.f32 %v1340_v34, %v1020_v5  ;;  %v1233_v34 = vunpack.c.l.b16 %v1199_v54  ;;  %v4251_v54 = vld [vmem:[%s3474_s19 + $0xc0] sm:$0xff] }
 0x15b   : > { %2976 = vmatmul.msk.bf16.gmra.mxu3 %vm707_vm4, %v4219_v30  ;;  %v1579_v63 = vsel %vm3501_vm3, %v1574_v38, %v1578_v60 }
 0x15c   : > { %v4242_v46 = vpack.c.b16 %v1233_v34, %v1232_v18  ;;  %v1583_v39 = vunpack.c.l.b16 %v1579_v63 }
 0x15d   : > { %v1630_v48 = vpop.f32.mrf.mxu0 }
 0x15e   : > { %v1474_v28 = vpop.f32.mrf.mxu3  ;;  %v1024_v51 = vpop.f32.mrf.mxu1 }
 0x15f   : > { %v1536_v5 = vadd.f32 %v1474_v28, %v1402_v17  ;;  %v1569_v17 = vsel %vm3501_vm3, %v1564_v58, %v1568_v22 }
 0x160   : > { %2993 = vmatmul.msk.bf16.gmra.mxu0 %vm707_vm4, %v3813_v53  ;;  %v1582_v2 = vunpack.c.l.b16 %v1569_v17 }
 0x161   : > { %v1342_v61 = vpop.f32.mrf.mxu2  ;;  %2923 = vmatmul.msk.bf16.gmra.mxu1 %vm707_vm4, %v4219_v30  ;;  %v4240_v7 = vadd.f32 %v1630_v48, %v1536_v5  ;;  %v1025_v48 = vadd.f32 %v1024_v51, %v4002_v26 }
 0x162   : > { %v1403_v9 = vadd.f32 %v1342_v61, %v1022_v24  ;;  %v4258_v22 = vpack.c.b16 %v1583_v39, %v1582_v2 }
 0x165   : > { %v1632_v43 = vpop.f32.mrf.mxu0 }
 0x166   : > { %v1476_v15 = vpop.f32.mrf.mxu3  ;;  %2956 = vmatmul.msk.bf16.gmra.mxu2 %vm707_vm4, %v4242_v46  ;;  %v1026_v47 = vpop.f32.mrf.mxu1 }
 0x167   : > { %v1537_v31 = vadd.f32 %v1476_v15, %v1403_v9  ;;  %v1027_v26 = vadd.f32 %v1026_v47, %v4019_v0 }
 0x169   : > { %v1345_v29 = vpop.f32.mrf.mxu2  ;;  %v4254_v28 = vadd.f32 %v1632_v43, %v1537_v31 }
 0x16a   : > { %v1404_v18 = vadd.f32 %v1345_v29, %v1025_v48 }
 0x16b   : > { %2977 = vmatmul.msk.bf16.gmra.mxu3 %vm707_vm4, %v4251_v54 }
 0x16d   : > { %v1635_v34 = vpop.f32.mrf.mxu0 }
 0x16e   : > { %v1479_v5 = vpop.f32.mrf.mxu3  ;;  %v1029_v24 = vpop.f32.mrf.mxu1 }
 0x16f   : > { %v1538_v61 = vadd.f32 %v1479_v5, %v1404_v18  ;;  %v1030_v63 = vadd.f32 %v1029_v24, %v3904_v16 }
 0x170   : > { %2994 = vmatmul.msk.bf16.gmra.mxu0 %vm707_vm4, %v4258_v22 }
 0x171   : > { %v1347_v51 = vpop.f32.mrf.mxu2  ;;  %2997 = vmatmul.msk.bf16.vlgmr.msra.gmra.mxu1 %vm707_vm4, %v3838_v55  ;;  %v4265_v58 = vadd.f32 %v1635_v34, %v1538_v61 }
 0x172   : > { %v1405_v38 = vadd.f32 %v1347_v51, %v1027_v26 }
 0x175   : > { %v1637_v60 = vpop.f32.mrf.mxu0 }
 0x176   : > { %v1481_v9 = vpop.f32.mrf.mxu3  ;;  %3018 = vmatmul.msk.bf16.vlgmr.msra.gmra.mxu2 %vm707_vm4, %v3850_v6  ;;  %v1031_v43 = vpop.f32.mrf.mxu1 }
 0x177   : > { %v1539_v17 = vadd.f32 %v1481_v9, %v1405_v38  ;;  %v1032_v6 = vadd.f32 %v1031_v43, %v3926_v57 }
 0x179   : > { %v1350_v15 = vpop.f32.mrf.mxu2  ;;  %v4270_v31 = vadd.f32 %v1637_v60, %v1539_v17 }
 0x17a   : > { %v1406_v0 = vadd.f32 %v1350_v15, %v1030_v63 }
 0x17b   : > { %3035 = vmatmul.msk.bf16.vlgmr.msra.gmra.mxu3 %vm707_vm4, %v3741_v45 }
 0x17d   : > { %v1640_v55 = vpop.f32.mrf.mxu0 }
 0x17e   : > { %v1484_v47 = vpop.f32.mrf.mxu3  ;;  %v1034_v48 = vpop.f32.mrf.mxu1 }
 0x17f   : > { %v1540_v2 = vadd.f32 %v1484_v47, %v1406_v0  ;;  %v1035_v24 = vadd.f32 %v1034_v48, %v3946_v59 }
 0x180   : > { %3053 = vmatmul.msk.bf16.vlgmr.msra.gmra.mxu0 %vm707_vm4, %v3864_v52 }
 0x181   : > { %v1352_v39 = vpop.f32.mrf.mxu2  ;;  %2998 = vmatmul.msk.bf16.gmra.mxu1 %vm707_vm4, %v3864_v52  ;;  %v4279_v16 = vadd.f32 %v1640_v55, %v1540_v2 }
 0x182   : > { %v1407_v29 = vadd.f32 %v1352_v39, %v1032_v6 }
 0x185   : > { %v1642_v18 = vpop.f32.mrf.mxu0 }
 0x186   : > { %v1486_v34 = vpop.f32.mrf.mxu3  ;;  %3019 = vmatmul.msk.bf16.gmra.mxu2 %vm707_vm4, %v3870_v41  ;;  %v1036_v45 = vpop.f32.mrf.mxu1 }
 0x187   : > { %v1541_v5 = vadd.f32 %v1486_v34, %v1407_v29  ;;  %v1037_v41 = vadd.f32 %v1036_v45, %v3964_v3 }
 0x189   : > { %v1355_v61 = vpop.f32.mrf.mxu2  ;;  %v4284_v26 = vadd.f32 %v1642_v18, %v1541_v5 }
 0x18a   : > { %v1408_v57 = vadd.f32 %v1355_v61, %v1035_v24 }
 0x18b   : > { %3036 = vmatmul.msk.bf16.gmra.mxu3 %vm707_vm4, %v3831_v20 }
 0x18d   : > { %v1645_v52 = vpop.f32.mrf.mxu0 }
 0x18e   : > { %v1489_v51 = vpop.f32.mrf.mxu3  ;;  %v1039_v38 = vpop.f32.mrf.mxu1 }
 0x18f   : > { %v1542_v60 = vadd.f32 %v1489_v51, %v1408_v57  ;;  %v1040_v0 = vadd.f32 %v1039_v38, %v3983_v23 }
 0x190   : > { %3054 = vmatmul.msk.bf16.gmra.mxu0 %vm707_vm4, %v3884_v40 }
 0x191   : > { %v1357_v9 = vpop.f32.mrf.mxu2  ;;  %2999 = vmatmul.msk.bf16.gmra.mxu1 %vm707_vm4, %v3884_v40  ;;  %v4293_v59 = vadd.f32 %v1645_v52, %v1542_v60 }
 0x192   : > { %v1409_v43 = vadd.f32 %v1357_v9, %v1037_v41 }
 0x195   : > { %v1647_v17 = vpop.f32.mrf.mxu0 }
 0x196   : > { %v1491_v63 = vpop.f32.mrf.mxu3  ;;  %3020 = vmatmul.msk.bf16.gmra.mxu2 %vm707_vm4, %v3892_v8  ;;  %v1041_v20 = vpop.f32.mrf.mxu1 }
 0x197   : > { %v1543_v15 = vadd.f32 %v1491_v63, %v1409_v43  ;;  %v1042_v8 = vadd.f32 %v1041_v20, %v4004_v1  ;;  %v4911_v43 = vld [vmem:[#allocation21_spill] sm:$0xff]  ;;  %v4912_v63 = vld [vmem:[#allocation19_spill] sm:$0xff] }
 0x199   : > { %v1360_v55 = vpop.f32.mrf.mxu2  ;;  %v4298_v47 = vadd.f32 %v1647_v17, %v1543_v15 }
 0x19a   : > { %v1410_v3 = vadd.f32 %v1360_v55, %v1040_v0  ;;  %v4913_v55 = vld [vmem:[#allocation11_spill] sm:$0xff] }
 0x19b   : > { %3037 = vmatmul.msk.bf16.gmra.mxu3 %vm707_vm4, %v3513_v62 }
 0x19d   : > { %v1650_v40 = vpop.f32.mrf.mxu0 }
 0x19e   : > { %v1494_v48 = vpop.f32.mrf.mxu3  ;;  %v1044_v2 = vpop.f32.mrf.mxu1 }
 0x19f   : > { %v1544_v6 = vadd.f32 %v1494_v48, %v1410_v3  ;;  %v1045_v5 = vadd.f32 %v1044_v2, %v4026_v56  ;;  %v4914_v2 = vld [vmem:[#allocation24_spill] sm:$0xff] }
 0x1a0   : > { %3055 = vmatmul.msk.bf16.gmra.mxu0 %vm707_vm4, %v3912_v12 }
 0x1a1   : > { %v1362_v39 = vpop.f32.mrf.mxu2  ;;  %3000 = vmatmul.msk.bf16.gmra.mxu1 %vm707_vm4, %v3912_v12  ;;  %v4307_v23 = vadd.f32 %v1650_v40, %v1544_v6  ;;  %v4915_v6 = vld [vmem:[#allocation20_spill] sm:$0xff] }
 0x1a2   : > { %v1411_v29 = vadd.f32 %v1362_v39, %v1042_v8 }
 0x1a5   : > { %v1652_v18 = vpop.f32.mrf.mxu0 }
 0x1a6   : > { %v1496_v34 = vpop.f32.mrf.mxu3  ;;  %3021 = vmatmul.msk.bf16.gmra.mxu2 %vm707_vm4, %v3920_v27  ;;  %v1046_v62 = vpop.f32.mrf.mxu1 }
 0x1a7   : > { %v1545_v45 = vadd.f32 %v1496_v34, %v1411_v29  ;;  %v1047_v27 = vadd.f32 %v1046_v62, %v4041_v44 }
 0x1a9   : > { %v1365_v24 = vpop.f32.mrf.mxu2  ;;  %v4312_v61 = vadd.f32 %v1652_v18, %v1545_v45  ;;  %v4916_v45 = vld [vmem:[#allocation25_spill] sm:$0xff] }
 0x1aa   : > { %v1412_v1 = vadd.f32 %v1365_v24, %v1045_v5 }
 0x1ab   : > { %3038 = vmatmul.msk.bf16.gmra.mxu3 %vm707_vm4, %v3587_v37 }
 0x1ad   : > { %v1655_v12 = vpop.f32.mrf.mxu0 }
 0x1ae   : > { %v1499_v57 = vpop.f32.mrf.mxu3  ;;  %v1049_v52 = vpop.f32.mrf.mxu1 }
 0x1af   : > { %v1546_v51 = vadd.f32 %v1499_v57, %v1412_v1  ;;  %v1050_v20 = vadd.f32 %v1049_v52, %v4912_v63  ;;  %v4917_v1 = vld [vmem:[#allocation22_spill] sm:$0xff] }
 0x1b0   : > { %3056 = vmatmul.msk.bf16.gmra.mxu0 %vm707_vm4, %v3944_v33 }
 0x1b1   : > { %v1367_v38 = vpop.f32.mrf.mxu2  ;;  %3001 = vmatmul.msk.bf16.gmra.mxu1 %vm707_vm4, %v3944_v33  ;;  %v4321_v56 = vadd.f32 %v1655_v12, %v1546_v51 }
 0x1b2   : > { %v1413_v60 = vadd.f32 %v1367_v38, %v1047_v27  ;;  %v4918_v27 = vld [vmem:[#allocation17_spill] sm:$0xff] }
 0x1b5   : > { %v1657_v41 = vpop.f32.mrf.mxu0 }
 0x1b6   : > { %v1501_v9 = vpop.f32.mrf.mxu3  ;;  %3022 = vmatmul.msk.bf16.gmra.mxu2 %vm707_vm4, %v4911_v43  ;;  %v1051_v37 = vpop.f32.mrf.mxu1  ;;  %v4919_v43 = vld [vmem:[#allocation27_spill] sm:$0xff] }
 0x1b7   : > { %v1547_v17 = vadd.f32 %v1501_v9, %v1413_v60  ;;  %v1052_v8 = vadd.f32 %v1051_v37, %v4915_v6  ;;  %v4920_v37 = vld [vmem:[#allocation23_spill] sm:$0xff] }
 0x1b9   : > { %v1370_v15 = vpop.f32.mrf.mxu2  ;;  %v4326_v0 = vadd.f32 %v1657_v41, %v1547_v17 }
 0x1ba   : > { %v1414_v44 = vadd.f32 %v1370_v15, %v1050_v20 }
 0x1bb   : > { %3039 = vmatmul.msk.bf16.gmra.mxu3 %vm707_vm4, %v4913_v55 }
 0x1bd   : > { %v1660_v33 = vpop.f32.mrf.mxu0 }
 0x1be   : > { %v1504_v3 = vpop.f32.mrf.mxu3  ;;  %v1054_v40 = vpop.f32.mrf.mxu1 }
 0x1bf   : > { %v1548_v48 = vadd.f32 %v1504_v3, %v1414_v44  ;;  %v1055_v12 = vadd.f32 %v1054_v40, %v4917_v1  ;;  %v4925_v1 = vld [vmem:[#allocation28_spill] sm:$0xff] }
 0x1c0   : > { %3057 = vmatmul.msk.bf16.gmra.mxu0 %vm707_vm4, %v4914_v2 }
 0x1c1   : > { %v1372_v39 = vpop.f32.mrf.mxu2  ;;  %3002 = vmatmul.msk.bf16.gmra.mxu1 %vm707_vm4, %v4914_v2  ;;  %v4335_v29 = vadd.f32 %v1660_v33, %v1548_v48  ;;  %v4921_v33 = vld [vmem:[#allocation29_spill] sm:$0xff]  ;;  %v4922_v48 = vld [vmem:[#allocation26_spill] sm:$0xff] }
 0x1c2   : > { %v1415_v18 = vadd.f32 %v1372_v39, %v1052_v8 }
 0x1c5   : > { %v1662_v34 = vpop.f32.mrf.mxu0 }
 0x1c6   : > { %v1506_v62 = vpop.f32.mrf.mxu3  ;;  %3023 = vmatmul.msk.bf16.gmra.mxu2 %vm707_vm4, %v4916_v45  ;;  %v1056_v5 = vpop.f32.mrf.mxu1 }
 0x1c7   : > { %v1549_v24 = vadd.f32 %v1506_v62, %v1415_v18  ;;  %v1057_v17 = vadd.f32 %v1056_v5, %v4920_v37  ;;  %v4923_v18 = vld [vmem:[#allocation5_spill] sm:$0xff] }
 0x1c9   : > { %v1375_v57 = vpop.f32.mrf.mxu2  ;;  %v4340_v52 = vadd.f32 %v1662_v34, %v1549_v24  ;;  %v4924_v24 = vld [vmem:[#allocation31_spill] sm:$0xff] }
 0x1ca   : > { %v1416_v51 = vadd.f32 %v1375_v57, %v1055_v12 }
 0x1cb   : > { %3040 = vmatmul.msk.bf16.gmra.mxu3 %vm707_vm4, %v4918_v27 }
 0x1cd   : > { %v1665_v38 = vpop.f32.mrf.mxu0 }
 0x1ce   : > { %v1509_v60 = vpop.f32.mrf.mxu3  ;;  %v1059_v41 = vpop.f32.mrf.mxu1 }
 0x1cf   : > { %v1550_v9 = vadd.f32 %v1509_v60, %v1416_v51  ;;  %v1060_v2 = vadd.f32 %v1059_v41, %v4922_v48 }
 0x1d0   : > { %3058 = vmatmul.msk.bf16.gmra.mxu0 %vm707_vm4, %v4919_v43 }
 0x1d1   : > { %v1377_v63 = vpop.f32.mrf.mxu2  ;;  %3003 = vmatmul.msk.bf16.gmra.mxu1 %vm707_vm4, %v4919_v43  ;;  %v4349_v20 = vadd.f32 %v1665_v38, %v1550_v9  ;;  %v4926_v43 = vld [vmem:[#allocation30_spill] sm:$0xff] }
 0x1d2   : > { %v1417_v15 = vadd.f32 %v1377_v63, %v1057_v17 }
 0x1d5   : > { %v1667_v44 = vpop.f32.mrf.mxu0 }
 0x1d6   : > { %v1511_v55 = vpop.f32.mrf.mxu3  ;;  %3024 = vmatmul.msk.bf16.gmra.mxu2 %vm707_vm4, %v4921_v33  ;;  %v1061_v3 = vpop.f32.mrf.mxu1 }
 0x1d7   : > { %v1551_v40 = vadd.f32 %v1511_v55, %v1417_v15  ;;  %v1062_v12 = vadd.f32 %v1061_v3, %v4925_v1 }
 0x1d9   : > { %v1380_v6 = vpop.f32.mrf.mxu2  ;;  %v4354_v8 = vadd.f32 %v1667_v44, %v1551_v40  ;;  %v4927_v40 = vld [vmem:[#allocation32_spill] sm:$0xff] }
 0x1da   : > { %v1418_v39 = vadd.f32 %v1380_v6, %v1060_v2 }
 0x1db   : > { %3041 = vmatmul.msk.bf16.gmra.mxu3 %vm707_vm4, %v4923_v18 }
 0x1dd   : > { %v1670_v34 = vpop.f32.mrf.mxu0 }
 0x1de   : > { %v1514_v62 = vpop.f32.mrf.mxu3  ;;  %v1064_v45 = vpop.f32.mrf.mxu1 }
 0x1df   : > { %v1552_v5 = vadd.f32 %v1514_v62, %v1418_v39  ;;  %v1065_v37 = vadd.f32 %v1064_v45, %v4926_v43 }
 0x1e0   : > { %3059 = vmatmul.msk.bf16.gmra.mxu0 %vm707_vm4, %v4924_v24 }
 0x1e1   : > { %v1382_v57 = vpop.f32.mrf.mxu2  ;;  %3004 = vmatmul.msk.bf16.gmra.mxu1 %vm707_vm4, %v4924_v24  ;;  %v4363_v51 = vadd.f32 %v1670_v34, %v1552_v5 }
 0x1e2   : > { %v1419_v27 = vadd.f32 %v1382_v57, %v1062_v12 }
 0x1e5   : > { %v1672_v38 = vpop.f32.mrf.mxu0 }
 0x1e6   : > { %v1516_v60 = vpop.f32.mrf.mxu3  ;;  %3025 = vmatmul.msk.bf16.gmra.mxu2 %vm707_vm4, %v4056_v19  ;;  %v1066_v41 = vpop.f32.mrf.mxu1 }
 0x1e7   : > { %v1553_v9 = vadd.f32 %v1516_v60, %v1419_v27  ;;  %v1067_v19 = vadd.f32 %v1066_v41, %v4927_v40  ;;  %v4389_v27 = vld [vmem:[%s4807_s2] ss:$0 sm:$0xff] }
 0x1e9   : > { %v1385_v17 = vpop.f32.mrf.mxu2  ;;  %v4368_v63 = vadd.f32 %v1672_v38, %v1553_v9 }
 0x1ea   : > { %v1420_v15 = vadd.f32 %v1385_v17, %v1065_v37 }
 0x1eb   : > { %3042 = vmatmul.msk.bf16.gmra.mxu3 %vm707_vm4, %v3612_v4 }
 0x1ed   : > { %v1675_v44 = vpop.f32.mrf.mxu0 }
 0x1ee   : > { %v1519_v55 = vpop.f32.mrf.mxu3  ;;  %v1740_v33 = vpop.f32.mrf.mxu1 }
 0x1ef   : > { %v1554_v3 = vadd.f32 %v1519_v55, %v1420_v15  ;;  %v1820_v62 = vadd.f32 %v1740_v33, %v4071_v32  ;;  %v4928_v33 = vld [vmem:[#allocation18_spill] sm:$0xff] }
 0x1f0   : > { %3060 = vmatmul.msk.bf16.gmra.mxu0 %vm707_vm4, %v4073_v10 }
 0x1f1   : > { %v1387_v48 = vpop.f32.mrf.mxu2  ;;  %3005 = vmatmul.msk.bf16.gmra.mxu1 %vm707_vm4, %v4073_v10  ;;  %v4377_v2 = vadd.f32 %v1675_v44, %v1554_v3 }
 0x1f2   : > { %v1421_v6 = vadd.f32 %v1387_v48, %v1067_v19 }
 0x1f5   : > { %v1677_v39 = vpop.f32.mrf.mxu0 }
 0x1f6   : > { %v1521_v18 = vpop.f32.mrf.mxu3  ;;  %3026 = vmatmul.msk.bf16.gmra.mxu2 %vm707_vm4, %v4080_v42  ;;  %v1742_v4 = vpop.f32.mrf.mxu1 }
 0x1f7   : > { %v1555_v34 = vadd.f32 %v1521_v18, %v1421_v6  ;;  %v1821_v42 = vadd.f32 %v1742_v4, %v4084_v35 }
 0x1f9   : > { %v1874_v45 = vpop.f32.mrf.mxu2  ;;  %v4382_v5 = vadd.f32 %v1677_v39, %v1555_v34  ;;  %v4929_v34 = vld [vmem:[#allocation34_spill] sm:$0xff] }
 0x1fa   : > { %v1954_v24 = vadd.f32 %v1874_v45, %v1820_v62  ;;  %v4930_v62 = vld [vmem:[#allocation12_spill] sm:$0xff] }
 0x1fb   : > { %3043 = vmatmul.msk.bf16.gmra.mxu3 %vm707_vm4, %v3697_v25 }
 0x1fd   : > { %v2170_v10 = vpop.f32.mrf.mxu0 }
 0x1fe   : > { %v2030_v1 = vpop.f32.mrf.mxu3  ;;  %v1745_v12 = vpop.f32.mrf.mxu1 }
 0x1ff   : > { %v2110_v57 = vadd.f32 %v2030_v1, %v1954_v24  ;;  %v1822_v44 = vadd.f32 %v1745_v12, %v4097_v21 }
 0x200   : > { %3061 = vmatmul.msk.bf16.gmra.mxu0 %vm707_vm4, %v4099_v13 }
 0x201   : > { %v2250_v32 = vadd.f32 %v2170_v10, %v2110_v57  ;;  %v1876_v38 = vpop.f32.mrf.mxu2  ;;  %3006 = vmatmul.msk.bf16.gmra.mxu1 %vm707_vm4, %v4099_v13 }
 0x202   : > { %v1955_v60 = vadd.f32 %v1876_v38, %v1821_v42 }
 0x203   : > { %v4397_v25 = vadd.f32 %v4389_v27, %v2250_v32 }
 0x205   : > { %v2318_v41 = vmin.f32 %v4397_v25, 20.0  ;;  %v2172_v9 = vpop.f32.mrf.mxu0  ;;  %vm2478_vm8 = vcmp.gt.f32.partialorder %v4397_v25, 20.0 }
 0x206   : > { %v2032_v43 = vpop.f32.mrf.mxu3  ;;  %3027 = vmatmul.msk.bf16.gmra.mxu2 %vm707_vm4, %v4106_v50  ;;  %v1747_v37 = vpop.f32.mrf.mxu1 }
 0x207   : > { %v2350_v17 = vmul.f32 1.442695, %v2318_v41  ;;  %v2111_v15 = vadd.f32 %v2032_v43, %v1955_v60  ;;  %v1823_v45 = vadd.f32 %v1747_v37, %v4930_v62  ;;  %v4931_v60 = vld [vmem:[#allocation35_spill] sm:$0xff] }
 0x209   : > { %3155 = vpow2.f32 %v2350_v17  ;;  %v2251_v35 = vadd.f32 %v2172_v9, %v2111_v15  ;;  %v1879_v55 = vpop.f32.mrf.mxu2 }
 0x20a   : > { %v1956_v3 = vadd.f32 %v1879_v55, %v1822_v44 }
 0x20b   : > { %v4404_v13 = vadd.f32 %v4389_v27, %v2251_v35  ;;  %3044 = vmatmul.msk.bf16.gmra.mxu3 %vm707_vm4, %v4928_v33  ;;  %v4932_v35 = vld [vmem:[#allocation33_spill] sm:$0xff] }
 0x20d   : > { %v2319_v40 = vmin.f32 %v4404_v13, 20.0  ;;  %v2175_v19 = vpop.f32.mrf.mxu0  ;;  %vm2479_vm9 = vcmp.gt.f32.partialorder %v4404_v13, 20.0 }
 0x20e   : > { %v2035_v48 = vpop.f32.mrf.mxu3  ;;  %v1750_v50 = vpop.f32.mrf.mxu1 }
 0x20f   : > { %v3156_v6 = vpop.eup %3155  ;;  %v2352_v39 = vmul.f32 1.442695, %v2319_v40  ;;  %v2112_v18 = vadd.f32 %v2035_v48, %v1956_v3  ;;  %v1824_v44 = vadd.f32 %v1750_v50, %v4932_v35 }
 0x210   : > { %v2414_v4 = vadd.f32 2.0, %v3156_v6  ;;  %3062 = vmatmul.msk.bf16.gmra.mxu0 %vm707_vm4, %v4929_v34 }
 0x211   : > { %3157 = vpow2.f32 %v2352_v39  ;;  %v2252_v21 = vadd.f32 %v2175_v19, %v2112_v18  ;;  %v1881_v24 = vpop.f32.mrf.mxu2  ;;  %3007 = vmatmul.msk.bf16.gmra.mxu1 %vm707_vm4, %v4929_v34  ;;  %v4933_v19 = vld [vmem:[#allocation6_spill] sm:$0xff] }
 0x212   : > { %v2446_v10 = vmul.f32 %v3156_v6, %v2414_v4  ;;  %v1957_v12 = vadd.f32 %v1881_v24, %v1823_v45 }
 0x213   : > { %v4415_v1 = vadd.f32 %v4389_v27, %v2252_v21 }
 0x214   : > { %v2542_v57 = vadd.f32 2.0, %v2446_v10  ;;  %v2510_v3 = vmul.f32 %v2446_v10, %v4397_v25 }
 0x215   : > { %v2320_v32 = vmin.f32 %v4415_v1, 20.0  ;;  %v2177_v42 = vpop.f32.mrf.mxu0  ;;  %vm2480_vm10 = vcmp.gt.f32.partialorder %v4415_v1, 20.0 }
 0x216   : > { %3159 = vrcp.f32 %v2542_v57  ;;  %v2037_v38 = vpop.f32.mrf.mxu3  ;;  %3028 = vmatmul.msk.bf16.gmra.mxu2 %vm707_vm4, %v4931_v60  ;;  %v1752_v41 = vpop.f32.mrf.mxu1  ;;  %v4934_v57 = vld [vmem:[#allocation38_spill] sm:$0xff] }
 0x217   : > { %v3158_v9 = vpop.eup %3157  ;;  %v2354_v43 = vmul.f32 1.442695, %v2320_v32  ;;  %v2113_v37 = vadd.f32 %v2037_v38, %v1957_v12 }
 0x218   : > { %v2415_v17 = vadd.f32 2.0, %v3158_v9 }
 0x219   : > { %3161 = vpow2.f32 %v2354_v43  ;;  %v2253_v15 = vadd.f32 %v2177_v42, %v2113_v37  ;;  %v1884_v55 = vpop.f32.mrf.mxu2  ;;  %v4935_v42 = vld [vmem:[#allocation36_spill] sm:$0xff] }
 0x21a   : > { %v2447_v33 = vmul.f32 %v3158_v9, %v2415_v17  ;;  %v1958_v48 = vadd.f32 %v1884_v55, %v1824_v44  ;;  %v1825_v38 = vadd.f32 %v1752_v41, %v4935_v42 }
 0x21b   : > { %v4426_v40 = vadd.f32 %v4389_v27, %v2253_v15  ;;  %3045 = vmatmul.msk.bf16.gmra.mxu3 %vm707_vm4, %v4933_v19 }
 0x21c   : > { %v3160_v6 = vpop.eup %3159  ;;  %v2543_v39 = vadd.f32 2.0, %v2447_v33 }
 0x21d   : > { %v2606_v18 = vmul.f32 %v3160_v6, %v2510_v3  ;;  %v2321_v4 = vmin.f32 %v4426_v40, 20.0  ;;  %v2180_v34 = vpop.f32.mrf.mxu0  ;;  %v4936_v3 = vld [vmem:[#allocation39_spill] sm:$0xff]  ;;  %vm2481_vm11 = vcmp.gt.f32.partialorder %v4426_v40, 20.0 }
 0x21e   : > { %3163 = vrcp.f32 %v2543_v39  ;;  %v2040_v50 = vpop.f32.mrf.mxu3  ;;  %v1755_v21 = vpop.f32.mrf.mxu1 }
 0x21f   : > { %v3162_v62 = vpop.eup %3161  ;;  %v2638_v45 = vsel %vm2478_vm8, %v4397_v25, %v2606_v18  ;;  %v2356_v24 = vmul.f32 1.442695, %v2321_v4  ;;  %v2114_v10 = vadd.f32 %v2040_v50, %v1958_v48  ;;  %v2511_v25 = vmul.f32 %v2447_v33, %v4404_v13 }
 0x220   : > { %2670 = vst [vmem:[%s4433_s9] sm:$0xff] %v2638_v45  ;;  %v2416_v12 = vadd.f32 2.0, %v3162_v62  ;;  %3063 = vmatmul.msk.bf16.gmra.mxu0 %vm707_vm4, %v4934_v57 }
 0x221   : > { %3165 = vpow2.f32 %v2356_v24  ;;  %v2254_v32 = vadd.f32 %v2180_v34, %v2114_v10  ;;  %v1886_v60 = vpop.f32.mrf.mxu2  ;;  %3008 = vmatmul.msk.bf16.gmra.mxu1 %vm707_vm4, %v4934_v57  ;;  %v4937_v34 = vld [vmem:[#allocation37_spill] sm:$0xff] }
 0x222   : > { %v2448_v9 = vmul.f32 %v3162_v62, %v2416_v12  ;;  %v1959_v37 = vadd.f32 %v1886_v60, %v1825_v38  ;;  %v1826_v50 = vadd.f32 %v1755_v21, %v4937_v34  ;;  %v4938_v12 = vld [vmem:[#allocation7_spill] sm:$0xff] }
 0x223   : > { %v4443_v43 = vadd.f32 %v4389_v27, %v2254_v32 }
 0x224   : > { %v3164_v17 = vpop.eup %3163  ;;  %v2544_v15 = vadd.f32 2.0, %v2448_v9  ;;  %v2512_v24 = vmul.f32 %v2448_v9, %v4415_v1 }
 0x225   : > { %v2607_v35 = vmul.f32 %v3164_v17, %v2511_v25  ;;  %v2322_v44 = vmin.f32 %v4443_v43, 20.0  ;;  %v2182_v55 = vpop.f32.mrf.mxu0  ;;  %vm2482_vm12 = vcmp.gt.f32.partialorder %v4443_v43, 20.0 }
 0x226   : > { %3167 = vrcp.f32 %v2544_v15  ;;  %v2042_v41 = vpop.f32.mrf.mxu3  ;;  %3029 = vmatmul.msk.bf16.gmra.mxu2 %vm707_vm4, %v4936_v3  ;;  %v1757_v19 = vpop.f32.mrf.mxu1 }
 0x227   : > { %v3166_v33 = vpop.eup %3165  ;;  %v2639_v48 = vsel %vm2479_vm9, %v4404_v13, %v2607_v35  ;;  %v2358_v6 = vmul.f32 1.442695, %v2322_v44  ;;  %v2115_v39 = vadd.f32 %v2042_v41, %v1959_v37  ;;  %v4939_v44 = vld [vmem:[#allocation42_spill] sm:$0xff]  ;;  %v4940_v41 = vld [vmem:[#allocation40_spill] sm:$0xff] }
 0x228   : > { %2671 = vst [vmem:[%s4433_s9 + $0x8] sm:$0xff] %v2639_v48  ;;  %v2417_v18 = vadd.f32 2.0, %v3166_v33  ;;  %v1827_v3 = vadd.f32 %v1757_v19, %v4940_v41 }
 0x229   : > { %3169 = vpow2.f32 %v2358_v6  ;;  %v2255_v4 = vadd.f32 %v2182_v55, %v2115_v39  ;;  %v1889_v62 = vpop.f32.mrf.mxu2 }
 0x22a   : > { %v2449_v45 = vmul.f32 %v3166_v33, %v2417_v18  ;;  %v1960_v13 = vadd.f32 %v1889_v62, %v1826_v50 }
 0x22b   : > { %v4454_v10 = vadd.f32 %v4389_v27, %v2255_v4  ;;  %3046 = vmatmul.msk.bf16.gmra.mxu3 %vm707_vm4, %v4938_v12 }
 0x22c   : > { %v3168_v57 = vpop.eup %3167  ;;  %v2545_v32 = vadd.f32 2.0, %v2449_v45  ;;  %v2513_v6 = vmul.f32 %v2449_v45, %v4426_v40 }
 0x22d   : > { %v2608_v42 = vmul.f32 %v3168_v57, %v2512_v24  ;;  %v2323_v38 = vmin.f32 %v4454_v10, 20.0  ;;  %v2185_v60 = vpop.f32.mrf.mxu0  ;;  %v4941_v24 = vld [vmem:[#allocation9_spill] sm:$0xff]  ;;  %vm2483_vm13 = vcmp.gt.f32.partialorder %v4454_v10, 20.0 }
 0x22e   : > { %3171 = vrcp.f32 %v2545_v32  ;;  %v2045_v21 = vpop.f32.mrf.mxu3  ;;  %v1760_v25 = vpop.f32.mrf.mxu1 }
 0x22f   : > { %v3170_v9 = vpop.eup %3169  ;;  %v2640_v37 = vsel %vm2480_vm10, %v4415_v1, %v2608_v42  ;;  %v2360_v17 = vmul.f32 1.442695, %v2323_v38  ;;  %v2116_v15 = vadd.f32 %v2045_v21, %v1960_v13 }
 0x230   : > { %2672 = vst [vmem:[%s4433_s9 + $0x10] sm:$0xff] %v2640_v37  ;;  %v2418_v35 = vadd.f32 2.0, %v3170_v9  ;;  %3064 = vmatmul.msk.bf16.gmra.mxu0 %vm707_vm4, %v4939_v44 }
 0x231   : > { %3173 = vpow2.f32 %v2360_v17  ;;  %v2256_v55 = vadd.f32 %v2185_v60, %v2116_v15  ;;  %v1891_v33 = vpop.f32.mrf.mxu2  ;;  %3009 = vmatmul.msk.bf16.gmra.mxu1 %vm707_vm4, %v4939_v44  ;;  %v4942_v60 = vld [vmem:[#allocation41_spill] sm:$0xff] }
 0x232   : > { %v2450_v48 = vmul.f32 %v3170_v9, %v2418_v35  ;;  %v1961_v39 = vadd.f32 %v1891_v33, %v1827_v3  ;;  %v1828_v21 = vadd.f32 %v1760_v25, %v4942_v60  ;;  %v4943_v35 = vld [vmem:[#allocation13_spill] sm:$0xff] }
 0x233   : > { %v4469_v1 = vadd.f32 %v4389_v27, %v2256_v55 }
 0x234   : > { %v3172_v18 = vpop.eup %3171  ;;  %v2546_v4 = vadd.f32 2.0, %v2450_v48  ;;  %v2514_v17 = vmul.f32 %v2450_v48, %v4443_v43 }
 0x235   : > { %v2609_v34 = vmul.f32 %v3172_v18, %v2513_v6  ;;  %v2324_v50 = vmin.f32 %v4469_v1, 20.0  ;;  %v2187_v62 = vpop.f32.mrf.mxu0  ;;  %vm2484_vm14 = vcmp.gt.f32.partialorder %v4469_v1, 20.0 }
 0x236   : > { %3175 = vrcp.f32 %v2546_v4  ;;  %v2047_v19 = vpop.f32.mrf.mxu3  ;;  %3030 = vmatmul.msk.bf16.gmra.mxu2 %vm707_vm4, %v4941_v24  ;;  %v1762_v12 = vpop.f32.mrf.mxu1 }
 0x237   : > { %v3174_v45 = vpop.eup %3173  ;;  %v2641_v13 = vsel %vm2481_vm11, %v4426_v40, %v2609_v34  ;;  %v2362_v57 = vmul.f32 1.442695, %v2324_v50  ;;  %v2117_v32 = vadd.f32 %v2047_v19, %v1961_v39  ;;  %v4944_v50 = vld [vmem:[#allocation44_spill] sm:$0xff]  ;;  %v4945_v19 = vld [vmem:[#allocation10_spill] sm:$0xff] }
 0x238   : > { %2673 = vst [vmem:[%s4433_s9 + $0x18] sm:$0xff] %v2641_v13  ;;  %v2419_v42 = vadd.f32 2.0, %v3174_v45  ;;  %v1829_v24 = vadd.f32 %v1762_v12, %v4945_v19 }
 0x239   : > { %3177 = vpow2.f32 %v2362_v57  ;;  %v2257_v38 = vadd.f32 %v2187_v62, %v2117_v32  ;;  %v1894_v9 = vpop.f32.mrf.mxu2 }
 0x23a   : > { %v2451_v37 = vmul.f32 %v3174_v45, %v2419_v42  ;;  %v1962_v40 = vadd.f32 %v1894_v9, %v1828_v21 }
 0x23b   : > { %v4480_v15 = vadd.f32 %v4389_v27, %v2257_v38  ;;  %3047 = vmatmul.msk.bf16.gmra.mxu3 %vm707_vm4, %v4943_v35 }
 0x23c   : > { %v3176_v44 = vpop.eup %3175  ;;  %v2547_v55 = vadd.f32 2.0, %v2451_v37  ;;  %v2515_v57 = vmul.f32 %v2451_v37, %v4454_v10 }
 0x23d   : > { %v2610_v41 = vmul.f32 %v3176_v44, %v2514_v17  ;;  %v2325_v3 = vmin.f32 %v4480_v15, 20.0  ;;  %v2190_v33 = vpop.f32.mrf.mxu0  ;;  %vm2485_vm15 = vcmp.gt.f32.partialorder %v4480_v15, 20.0 }
 0x23e   : > { %3179 = vrcp.f32 %v2547_v55  ;;  %v2050_v25 = vpop.f32.mrf.mxu3  ;;  %v1765_v6 = vpop.f32.mrf.mxu1 }
 0x23f   : > { %v3178_v48 = vpop.eup %3177  ;;  %v2642_v39 = vsel %vm2482_vm12, %v4443_v43, %v2610_v41  ;;  %v2364_v18 = vmul.f32 1.442695, %v2325_v3  ;;  %v2118_v4 = vadd.f32 %v2050_v25, %v1962_v40  ;;  %v4946_v3 = vld [vmem:[#allocation43_spill] sm:$0xff] }
 0x240   : > { %2674 = vst [vmem:[%s4433_s9 + $0x20] sm:$0xff] %v2642_v39  ;;  %v2420_v34 = vadd.f32 2.0, %v3178_v48  ;;  %3065 = vmatmul.msk.bf16.gmra.mxu0 %vm707_vm4, %v4944_v50  ;;  %v4947_v39 = vld [vmem:[#allocation45_spill] sm:$0xff] }
 0x241   : > { %3181 = vpow2.f32 %v2364_v18  ;;  %v2258_v62 = vadd.f32 %v2190_v33, %v2118_v4  ;;  %v1896_v45 = vpop.f32.mrf.mxu2  ;;  %3010 = vmatmul.msk.bf16.gmra.mxu1 %vm707_vm4, %v4944_v50  ;;  %v1830_v33 = vadd.f32 %v1765_v6, %v4946_v3  ;;  %v1715_v18 = vrot.slane %v4947_v39, 5 }
 0x242   : > { %v2452_v13 = vmul.f32 %v3178_v48, %v2420_v34  ;;  %v1963_v32 = vadd.f32 %v1896_v45, %v1829_v24  ;;  %v4512_v34 = vld [vmem:[%s3474_s19 + $0xcc] sm:$0xf]  ;;  %v4948_v45 = vld [vmem:[#allocation8_spill] sm:$0xff] }
 0x243   : > { %v4495_v43 = vadd.f32 %v4389_v27, %v2258_v62 }
 0x244   : > { %v3180_v42 = vpop.eup %3179  ;;  %v2548_v38 = vadd.f32 2.0, %v2452_v13 }
 0x245   : > { %v2611_v60 = vmul.f32 %v3180_v42, %v2515_v57  ;;  %v2326_v21 = vmin.f32 %v4495_v43, 20.0  ;;  %v2192_v9 = vpop.f32.mrf.mxu0  ;;  %v4518_v57 = vld [vmem:[%s3474_s19 + $0xd0] sm:$0xf]  ;;  %vm2486_vm0 = vcmp.gt.f32.partialorder %v4495_v43, 20.0 }
 0x246   : > { %3183 = vrcp.f32 %v2548_v38  ;;  %v2052_v12 = vpop.f32.mrf.mxu3  ;;  %3031 = vmatmul.msk.bf16.gmra.mxu2 %vm707_vm4, %v4219_v30  ;;  %v1767_v17 = vpop.f32.mrf.mxu1  ;;  %v2516_v30 = vmul.f32 %v2452_v13, %v4469_v1  ;;  %v2995_v13 = vrot.slane %v4948_v45, 9  ;;  %v1718_v38 = vrot.slane %v4226_v11, 5  ;;  %v4544_v45 = vld [vmem:[%s3474_s19 + $0xd4] sm:$0x1] }
 0x247   : > { %v3182_v37 = vpop.eup %3181  ;;  %v2643_v35 = vsel %vm2483_vm13, %v4454_v10, %v2611_v60  ;;  %v2366_v40 = vmul.f32 1.442695, %v2326_v21  ;;  %v2119_v44 = vadd.f32 %v2052_v12, %v1963_v32  ;;  %v1987_v60 = vshrl.u32 %v4512_v34, 16 }
 0x248   : > { %2675 = vst [vmem:[%s4433_s9 + $0x28] sm:$0xff] %v2643_v35  ;;  %v2421_v55 = vadd.f32 2.0, %v3182_v37  ;;  %v1990_v35 = vshll.u32 %v4512_v34, 16 }
 0x249   : > { %3185 = vpow2.f32 %v2366_v40  ;;  %v2259_v41 = vadd.f32 %v2192_v9, %v2119_v44  ;;  %v1899_v25 = vpop.f32.mrf.mxu2  ;;  %v1996_v44 = vshll.u32 %v4518_v57, 16  ;;  %v1989_v39 = vrot.slane %v1987_v60, 4 }
 0x24a   : > { %v2453_v48 = vmul.f32 %v3182_v37, %v2421_v55  ;;  %v1964_v10 = vadd.f32 %v1899_v25, %v1830_v33  ;;  %v2000_v55 = vshrl.u32 %v4518_v57, 16  ;;  %v1716_v33 = vsel %vm3804_vm7, %v2995_v13, %v1715_v18 }
 0x24b   : > { %v4507_v4 = vadd.f32 %v4389_v27, %v2259_v41  ;;  %3048 = vmatmul.msk.bf16.gmra.mxu3 %vm707_vm4, %v3813_v53  ;;  %v1717_v53 = vrot.slane %v1715_v18, 4  ;;  %v1831_v41 = vadd.f32 %v1767_v17, %v4223_v49  ;;  %v1992_v49 = vrot.slane %v1990_v35, 5 }
 0x24c   : > { %v3184_v50 = vpop.eup %3183  ;;  %v2549_v62 = vadd.f32 2.0, %v2453_v48  ;;  %v1722_v13 = vunpack.c.l.b16 %v1716_v33 }
 0x24d   : > { %v2612_v6 = vmul.f32 %v3184_v50, %v2516_v30  ;;  %v2327_v19 = vmin.f32 %v4507_v4, 20.0  ;;  %v2195_v24 = vpop.f32.mrf.mxu0  ;;  %v1719_v25 = vsel %vm3804_vm7, %v1717_v53, %v1718_v38  ;;  %v2517_v30 = vmul.f32 %v2453_v48, %v4480_v15 }
 0x24e   : > { %3187 = vrcp.f32 %v2549_v62  ;;  %v2055_v32 = vpop.f32.mrf.mxu3  ;;  %v1770_v42 = vpop.f32.mrf.mxu1  ;;  %vm2487_vm1 = vcmp.gt.f32.partialorder %v4507_v4, 20.0 }
 0x24f   : > { %v3186_v21 = vpop.eup %3185  ;;  %v2644_v9 = vsel %vm2484_vm14, %v4469_v1, %v2612_v6  ;;  %v2368_v12 = vmul.f32 1.442695, %v2327_v19  ;;  %v2120_v37 = vadd.f32 %v2055_v32, %v1964_v10  ;;  %v4540_v6 = vrot.slane %v1996_v44, 5 }
 0x250   : > { %2676 = vst [vmem:[%s4433_s9 + $0x30] sm:$0xff] %v2644_v9  ;;  %v2422_v40 = vadd.f32 2.0, %v3186_v21  ;;  %3066 = vmatmul.msk.bf16.gmra.mxu0 %vm707_vm4, %v4242_v46  ;;  %v1723_v32 = vunpack.c.l.b16 %v1719_v25 }
 0x251   : > { %3189 = vpow2.f32 %v2368_v12  ;;  %v2260_v11 = vadd.f32 %v2195_v24, %v2120_v37  ;;  %v1901_v3 = vpop.f32.mrf.mxu2  ;;  %3011 = vmatmul.msk.bf16.gmra.mxu1 %vm707_vm4, %v4242_v46  ;;  %v2002_v46 = vrot.slane %v2000_v55, 4  ;;  %v1993_v12 = vor.u32 %v1992_v49, %v1989_v39 }
 0x252   : > { %v2454_v1 = vmul.f32 %v3186_v21, %v2422_v40  ;;  %v1965_v50 = vadd.f32 %v1901_v3, %v1831_v41  ;;  %v2006_v40 = vshll.u32 %v4544_v45, 16  ;;  %v1832_v55 = vadd.f32 %v1770_v42, %v4240_v7 }
 0x253   : > { %v4538_v10 = vadd.f32 %v4389_v27, %v2260_v11  ;;  %v2003_v35 = vor.u32 %v2002_v46, %v4540_v6  ;;  %v1724_v41 = vpack.c.b16 %v1723_v32, %v1722_v13  ;;  %v1994_v25 = vrot.slane %v1993_v12, 4  ;;  %v3091_v12 = vld [vmem:[%s3474_s19 + $0xcc] sm:$0xff] }
 0x254   : > { %v3188_v17 = vpop.eup %3187  ;;  %v2550_v62 = vadd.f32 2.0, %v2454_v1  ;;  %v2518_v3 = vmul.f32 %v2454_v1, %v4495_v43  ;;  %v2008_v49 = vrot.slane %v2006_v40, 5  ;;  %v2145_v7 = vrot.slane %v4518_v57, 5 }
 0x255   : > { %v2613_v19 = vmul.f32 %v3188_v17, %v2517_v30  ;;  %v2328_v18 = vmin.f32 %v4538_v10, 20.0  ;;  %v2197_v24 = vpop.f32.mrf.mxu0  ;;  %v3051_v32 = vrot.slane %v4512_v34, 9  ;;  %vm2488_vm2 = vcmp.gt.f32.partialorder %v4538_v10, 20.0 }
 0x256   : > { %3191 = vrcp.f32 %v2550_v62  ;;  %v2057_v48 = vpop.f32.mrf.mxu3  ;;  %3032 = vmatmul.msk.bf16.gmra.mxu2 %vm707_vm4, %v4251_v54  ;;  %v1772_v53 = vpop.f32.mrf.mxu1 }
 0x257   : > { %v3190_v38 = vpop.eup %3189  ;;  %v2645_v60 = vsel %vm2485_vm15, %v4480_v15, %v2613_v19  ;;  %v2370_v21 = vmul.f32 1.442695, %v2328_v18  ;;  %v2121_v9 = vadd.f32 %v2057_v48, %v1965_v50  ;;  %v2004_v50 = vrot.slane %v2003_v35, 4 }
 0x258   : > { %2677 = vst [vmem:[%s4433_s9 + $0x38] sm:$0xff] %v2645_v60  ;;  %v2423_v37 = vadd.f32 2.0, %v3190_v38  ;;  %v1999_v48 = vsel %vm3501_vm3, %v1994_v25, %v4540_v6 }
 0x259   : > { %3193 = vpow2.f32 %v2370_v21  ;;  %v2261_v44 = vadd.f32 %v2197_v24, %v2121_v9  ;;  %v1904_v54 = vpop.f32.mrf.mxu2  ;;  %v2009_v13 = vsel %vm3501_vm3, %v2004_v50, %v2008_v49  ;;  %v2148_v9 = vrot.slane %v4544_v45, 5 }
 0x25a   : > { %v2455_v11 = vmul.f32 %v3190_v38, %v2423_v37  ;;  %v1966_v33 = vadd.f32 %v1904_v54, %v1832_v55  ;;  %v2147_v38 = vrot.slane %v2145_v7, 4  ;;  %v2012_v37 = vunpack.c.l.b16 %v1999_v48 }
 0x25b   : > { %v4556_v15 = vadd.f32 %v4389_v27, %v2261_v44  ;;  %3049 = vmatmul.msk.bf16.gmra.mxu3 %vm707_vm4, %v4258_v22  ;;  %v2013_v34 = vunpack.c.l.b16 %v2009_v13  ;;  %v2146_v45 = vsel %vm3804_vm7, %v3051_v32, %v2145_v7 }
 0x25c   : > { %v3192_v39 = vpop.eup %3191  ;;  %v2551_v30 = vadd.f32 2.0, %v2455_v11  ;;  %v2519_v35 = vmul.f32 %v2455_v11, %v4507_v4 }
 0x25d   : > { %v2614_v42 = vmul.f32 %v3192_v39, %v2518_v3  ;;  %v2329_v17 = vmin.f32 %v4556_v15, 20.0  ;;  %v2200_v62 = vpop.f32.mrf.mxu0  ;;  %v2014_v50 = vpack.c.b16 %v2013_v34, %v2012_v37  ;;  %vm2489_vm3 = vcmp.gt.f32.partialorder %v4556_v15, 20.0 }
 0x25e   : > { %3195 = vrcp.f32 %v2551_v30  ;;  %v2060_v1 = vpop.f32.mrf.mxu3  ;;  %v1775_v46 = vpop.f32.mrf.mxu1 }
 0x25f   : > { %v3194_v19 = vpop.eup %3193  ;;  %v2646_v22 = vsel %vm2486_vm0, %v4495_v43, %v2614_v42  ;;  %v2372_v18 = vmul.f32 1.442695, %v2329_v17  ;;  %v2122_v24 = vadd.f32 %v2060_v1, %v1966_v33  ;;  %v1833_v43 = vadd.f32 %v1772_v53, %v4254_v28 }
 0x260   : > { %2678 = vst [vmem:[%s4433_s9 + $0x40] sm:$0xff] %v2646_v22  ;;  %v2424_v57 = vadd.f32 2.0, %v3194_v19  ;;  %3067 = vmatmul.msk.bf16.gmra.mxu0 %vm707_vm4, %v1724_v41  ;;  %v2152_v42 = vunpack.c.l.b16 %v2146_v45  ;;  %v1834_v17 = vadd.f32 %v1775_v46, %v4265_v58 }
 0x261   : > { %3197 = vpow2.f32 %v2372_v18  ;;  %v2262_v60 = vadd.f32 %v2200_v62, %v2122_v24  ;;  %v1906_v21 = vpop.f32.mrf.mxu2  ;;  %3012 = vmatmul.msk.bf16.gmra.mxu1 %vm707_vm4, %v1724_v41  ;;  %v2149_v41 = vsel %vm3804_vm7, %v2147_v38, %v2148_v9 }
 0x262   : > { %v2456_v6 = vmul.f32 %v3194_v19, %v2424_v57  ;;  %v1967_v40 = vadd.f32 %v1906_v21, %v1833_v43  ;;  %v2153_v7 = vunpack.c.l.b16 %v2149_v41 }
 0x263   : > { %v4578_v36 = vadd.f32 %v4389_v27, %v2262_v60 }
 0x264   : > { %v3196_v44 = vpop.eup %3195  ;;  %v2552_v55 = vadd.f32 2.0, %v2456_v6  ;;  %v2520_v19 = vmul.f32 %v2456_v6, %v4538_v10  ;;  %v2154_v48 = vpack.c.b16 %v2153_v7, %v2152_v42 }
 0x265   : > { %v2615_v54 = vmul.f32 %v3196_v44, %v2519_v35  ;;  %v2330_v28 = vmin.f32 %v4578_v36, 20.0  ;;  %v2202_v53 = vpop.f32.mrf.mxu0 }
 0x266   : > { %3199 = vrcp.f32 %v2552_v55  ;;  %v2062_v11 = vpop.f32.mrf.mxu3  ;;  %3033 = vmatmul.msk.bf16.gmra.mxu2 %vm707_vm4, %v3091_v12  ;;  %v1777_v3 = vpop.f32.mrf.mxu1 }
 0x267   : > { %v3198_v33 = vpop.eup %3197  ;;  %v2647_v25 = vsel %vm2487_vm1, %v4507_v4, %v2615_v54  ;;  %v2374_v39 = vmul.f32 1.442695, %v2330_v28  ;;  %v2123_v30 = vadd.f32 %v2062_v11, %v1967_v40  ;;  %v1835_v12 = vadd.f32 %v1777_v3, %v4270_v31 }
 0x268   : > { %2679 = vst [vmem:[%s4433_s9 + $0x48] sm:$0xff] %v2647_v25  ;;  %v2425_v49 = vadd.f32 2.0, %v3198_v33 }
 0x269   : > { %3201 = vpow2.f32 %v2374_v39  ;;  %v2263_v14 = vadd.f32 %v2202_v53, %v2123_v30  ;;  %v1909_v62 = vpop.f32.mrf.mxu2 }
 0x26a   : > { %v2457_v1 = vmul.f32 %v3198_v33, %v2425_v49  ;;  %v1968_v4 = vadd.f32 %v1909_v62, %v1834_v17 }
 0x26b   : > { %v4592_v22 = vadd.f32 %v4389_v27, %v2263_v14  ;;  %3050 = vmatmul.msk.bf16.gmra.mxu3 %vm707_vm4, %v2014_v50 }
 0x26c   : > { %v3200_v18 = vpop.eup %3199  ;;  %v2553_v24 = vadd.f32 2.0, %v2457_v1  ;;  %v2521_v40 = vmul.f32 %v2457_v1, %v4556_v15 }
 0x26d   : > { %v2616_v57 = vmul.f32 %v3200_v18, %v2520_v19  ;;  %v2331_v13 = vmin.f32 %v4592_v22, 20.0  ;;  %v2205_v32 = vpop.f32.mrf.mxu0  ;;  %vm2491_vm5 = vcmp.gt.f32.partialorder %v4592_v22, 20.0 }
 0x26e   : > { %3203 = vrcp.f32 %v2553_v24  ;;  %v2065_v58 = vpop.f32.mrf.mxu3  ;;  %v1780_v46 = vpop.f32.mrf.mxu1 }
 0x26f   : > { %v3202_v38 = vpop.eup %3201  ;;  %v2648_v60 = vsel %vm2488_vm2, %v4538_v10, %v2616_v57  ;;  %v2376_v43 = vmul.f32 1.442695, %v2331_v13  ;;  %v2124_v21 = vadd.f32 %v2065_v58, %v1968_v4  ;;  %v1836_v30 = vadd.f32 %v1780_v46, %v4279_v16 }
 0x270   : > { %2680 = vst [vmem:[%s4433_s9 + $0x50] sm:$0xff] %v2648_v60  ;;  %v2426_v9 = vadd.f32 2.0, %v3202_v38  ;;  %3068 = vmatmul.msk.bf16.gmra.mxu0 %vm707_vm4, %v2154_v48  ;;  %vm2490_vm4 = vcmp.gt.f32.partialorder %v4578_v36, 20.0 }
 0x271   : > { %3205 = vpow2.f32 %v2376_v43  ;;  %v2264_v6 = vadd.f32 %v2205_v32, %v2124_v21  ;;  %v1911_v37 = vpop.f32.mrf.mxu2 }
 0x272   : > { %v2458_v35 = vmul.f32 %v3202_v38, %v2426_v9  ;;  %v1969_v44 = vadd.f32 %v1911_v37, %v1835_v12 }
 0x273   : > { %v4603_v34 = vadd.f32 %v4389_v27, %v2264_v6 }
 0x274   : > { %v3204_v10 = vpop.eup %3203  ;;  %v2554_v55 = vadd.f32 2.0, %v2458_v35  ;;  %v2522_v42 = vmul.f32 %v2458_v35, %v4578_v36 }
 0x275   : > { %v2617_v54 = vmul.f32 %v3204_v10, %v2521_v40  ;;  %v2332_v28 = vmin.f32 %v4603_v34, 20.0  ;;  %v2207_v53 = vpop.f32.mrf.mxu0  ;;  %vm2492_vm6 = vcmp.gt.f32.partialorder %v4603_v34, 20.0 }
 0x276   : > { %3207 = vrcp.f32 %v2554_v55  ;;  %v2067_v45 = vpop.f32.mrf.mxu3  ;;  %v1782_v31 = vpop.f32.mrf.mxu1 }
 0x277   : > { %v3206_v41 = vpop.eup %3205  ;;  %v2649_v11 = vsel %vm2489_vm3, %v4556_v15, %v2617_v54  ;;  %v2378_v3 = vmul.f32 1.442695, %v2332_v28  ;;  %v2125_v33 = vadd.f32 %v2067_v45, %v1969_v44  ;;  %v1837_v58 = vadd.f32 %v1782_v31, %v4284_v26 }
 0x278   : > { %2681 = vst [vmem:[%s4433_s9 + $0x58] sm:$0xff] %v2649_v11  ;;  %v2427_v25 = vadd.f32 2.0, %v3206_v41 }
 0x279   : > { %3209 = vpow2.f32 %v2378_v3  ;;  %v2265_v39 = vadd.f32 %v2207_v53, %v2125_v33  ;;  %v1914_v50 = vpop.f32.mrf.mxu2 }
 0x27a   : > { %v2459_v49 = vmul.f32 %v3206_v41, %v2427_v25  ;;  %v1970_v14 = vadd.f32 %v1914_v50, %v1836_v30 }
 0x27b   : > { %v4612_v7 = vadd.f32 %v4389_v27, %v2265_v39 }
 0x27c   : > { %v3208_v17 = vpop.eup %3207  ;;  %v2555_v62 = vadd.f32 2.0, %v2459_v49  ;;  %v2523_v60 = vmul.f32 %v2459_v49, %v4592_v22 }
 0x27d   : > { %v2618_v15 = vmul.f32 %v3208_v17, %v2522_v42  ;;  %v2333_v1 = vmin.f32 %v4612_v7, 20.0  ;;  %v2210_v19 = vpop.f32.mrf.mxu0  ;;  %vm2493_vm7 = vcmp.gt.f32.partialorder %v4612_v7, 20.0 }
 0x27e   : > { %3211 = vrcp.f32 %v2555_v62  ;;  %v2070_v4 = vpop.f32.mrf.mxu3  ;;  %v1785_v16 = vpop.f32.mrf.mxu1 }
 0x27f   : > { %v3210_v18 = vpop.eup %3209  ;;  %v2650_v24 = vsel %vm2490_vm4, %v4578_v36, %v2618_v15  ;;  %v2380_v48 = vmul.f32 1.442695, %v2333_v1  ;;  %v2126_v57 = vadd.f32 %v2070_v4, %v1970_v14  ;;  %v1838_v53 = vadd.f32 %v1785_v16, %v4293_v59 }
 0x280   : > { %2682 = vst [vmem:[%s4433_s9 + $0x60] sm:$0xff] %v2650_v24  ;;  %v2428_v13 = vadd.f32 2.0, %v3210_v18 }
 0x281   : > { %3213 = vpow2.f32 %v2380_v48  ;;  %v2266_v32 = vadd.f32 %v2210_v19, %v2126_v57  ;;  %v1916_v46 = vpop.f32.mrf.mxu2 }
 0x282   : > { %v2460_v38 = vmul.f32 %v3210_v18, %v2428_v13  ;;  %v1971_v21 = vadd.f32 %v1916_v46, %v1837_v58 }
 0x283   : > { %v4621_v43 = vadd.f32 %v4389_v27, %v2266_v32 }
 0x284   : > { %v3212_v9 = vpop.eup %3211  ;;  %v2556_v6 = vadd.f32 2.0, %v2460_v38  ;;  %v2524_v41 = vmul.f32 %v2460_v38, %v4603_v34 }
 0x285   : > { %v2619_v36 = vmul.f32 %v3212_v9, %v2523_v60  ;;  %v2334_v12 = vmin.f32 %v4621_v43, 20.0  ;;  %v2212_v37 = vpop.f32.mrf.mxu0  ;;  %vm2494_vm8 = vcmp.gt.f32.partialorder %v4621_v43, 20.0 }
 0x286   : > { %3215 = vrcp.f32 %v2556_v6  ;;  %v2072_v35 = vpop.f32.mrf.mxu3  ;;  %v1787_v26 = vpop.f32.mrf.mxu1 }
 0x287   : > { %v3214_v40 = vpop.eup %3213  ;;  %v2651_v44 = vsel %vm2491_vm5, %v4592_v22, %v2619_v36  ;;  %v2382_v10 = vmul.f32 1.442695, %v2334_v12  ;;  %v2127_v55 = vadd.f32 %v2072_v35, %v1971_v21  ;;  %v1839_v1 = vadd.f32 %v1787_v26, %v4298_v47 }
 0x288   : > { %2683 = vst [vmem:[%s4433_s9 + $0x68] sm:$0xff] %v2651_v44  ;;  %v2429_v54 = vadd.f32 2.0, %v3214_v40 }
 0x289   : > { %3217 = vpow2.f32 %v2382_v10  ;;  %v2267_v28 = vadd.f32 %v2212_v37, %v2127_v55  ;;  %v1919_v45 = vpop.f32.mrf.mxu2 }
 0x28a   : > { %v2461_v31 = vmul.f32 %v3214_v40, %v2429_v54  ;;  %v1972_v3 = vadd.f32 %v1919_v45, %v1838_v53 }
 0x28b   : > { %v4630_v11 = vadd.f32 %v4389_v27, %v2267_v28 }
 0x28c   : > { %v3216_v33 = vpop.eup %3215  ;;  %v2557_v25 = vadd.f32 2.0, %v2461_v31  ;;  %v2525_v16 = vmul.f32 %v2461_v31, %v4612_v7 }
 0x28d   : > { %v2620_v22 = vmul.f32 %v3216_v33, %v2524_v41  ;;  %v2335_v39 = vmin.f32 %v4630_v11, 20.0  ;;  %v2215_v30 = vpop.f32.mrf.mxu0  ;;  %vm2495_vm9 = vcmp.gt.f32.partialorder %v4630_v11, 20.0 }
 0x28e   : > { %3219 = vrcp.f32 %v2557_v25  ;;  %v2075_v50 = vpop.f32.mrf.mxu3  ;;  %v1790_v59 = vpop.f32.mrf.mxu1 }
 0x28f   : > { %v3218_v49 = vpop.eup %3217  ;;  %v2652_v42 = vsel %vm2492_vm6, %v4603_v34, %v2620_v22  ;;  %v2384_v14 = vmul.f32 1.442695, %v2335_v39  ;;  %v2128_v17 = vadd.f32 %v2075_v50, %v1972_v3  ;;  %v1840_v36 = vadd.f32 %v1790_v59, %v4307_v23 }
 0x290   : > { %2684 = vst [vmem:[%s4433_s9 + $0x70] sm:$0xff] %v2652_v42  ;;  %v2430_v62 = vadd.f32 2.0, %v3218_v49 }
 0x291   : > { %3221 = vpow2.f32 %v2384_v14  ;;  %v2268_v15 = vadd.f32 %v2215_v30, %v2128_v17  ;;  %v1921_v19 = vpop.f32.mrf.mxu2  ;;  %v4659_v30 = vld [vmem:[%s4807_s2] ss:$0 sm:$0xff] }
 0x292   : > { %v2462_v4 = vmul.f32 %v3218_v49, %v2430_v62  ;;  %v1973_v24 = vadd.f32 %v1921_v19, %v1839_v1 }
 0x293   : > { %v4639_v18 = vadd.f32 %v4389_v27, %v2268_v15 }
 0x294   : > { %v3220_v48 = vpop.eup %3219  ;;  %v2558_v57 = vadd.f32 2.0, %v2462_v4  ;;  %v2526_v35 = vmul.f32 %v2462_v4, %v4621_v43 }
 0x295   : > { %v2621_v34 = vmul.f32 %v3220_v48, %v2525_v16  ;;  %v2336_v13 = vmin.f32 %v4639_v18, 20.0  ;;  %v2217_v32 = vpop.f32.mrf.mxu0  ;;  %vm2496_vm10 = vcmp.gt.f32.partialorder %v4639_v18, 20.0 }
 0x296   : > { %3223 = vrcp.f32 %v2558_v57  ;;  %v2077_v58 = vpop.f32.mrf.mxu3  ;;  %v1792_v47 = vpop.f32.mrf.mxu1 }
 0x297   : > { %v3222_v46 = vpop.eup %3221  ;;  %v2653_v38 = vsel %vm2493_vm7, %v4612_v7, %v2621_v34  ;;  %v2386_v60 = vmul.f32 1.442695, %v2336_v13  ;;  %v2129_v21 = vadd.f32 %v2077_v58, %v1973_v24  ;;  %v1841_v33 = vadd.f32 %v1792_v47, %v4312_v61 }
 0x298   : > { %2685 = vst [vmem:[%s4433_s9 + $0x78] sm:$0xff] %v2653_v38  ;;  %v2431_v9 = vadd.f32 2.0, %v3222_v46 }
 0x299   : > { %3225 = vpow2.f32 %v2386_v60  ;;  %v2269_v6 = vadd.f32 %v2217_v32, %v2129_v21  ;;  %v1924_v12 = vpop.f32.mrf.mxu2 }
 0x29a   : > { %v2463_v37 = vmul.f32 %v3222_v46, %v2431_v9  ;;  %v1974_v40 = vadd.f32 %v1924_v12, %v1840_v36 }
 0x29b   : > { %v4648_v26 = vadd.f32 %v4389_v27, %v2269_v6 }
 0x29c   : > { %v3224_v44 = vpop.eup %3223  ;;  %v2559_v10 = vadd.f32 2.0, %v2463_v37  ;;  %v2527_v39 = vmul.f32 %v2463_v37, %v4630_v11 }
 0x29d   : > { %v2622_v7 = vmul.f32 %v3224_v44, %v2526_v35  ;;  %v2337_v55 = vmin.f32 %v4648_v26, 20.0  ;;  %v2220_v54 = vpop.f32.mrf.mxu0  ;;  %vm2497_vm11 = vcmp.gt.f32.partialorder %v4648_v26, 20.0 }
 0x29e   : > { %3227 = vrcp.f32 %v2559_v10  ;;  %v2080_v28 = vpop.f32.mrf.mxu3  ;;  %v1795_v23 = vpop.f32.mrf.mxu1 }
 0x29f   : > { %v3226_v53 = vpop.eup %3225  ;;  %v2654_v45 = vsel %vm2494_vm8, %v4621_v43, %v2622_v7  ;;  %v2388_v31 = vmul.f32 1.442695, %v2337_v55  ;;  %v2130_v41 = vadd.f32 %v2080_v28, %v1974_v40  ;;  %v1842_v48 = vadd.f32 %v1795_v23, %v4321_v56 }
 0x2a0   : > { %2686 = vst [vmem:[%s4433_s9 + $0x80] sm:$0xff] %v2654_v45  ;;  %v2432_v27 = vadd.f32 2.0, %v3226_v53 }
 0x2a1   : > { %3229 = vpow2.f32 %v2388_v31  ;;  %v2270_v3 = vadd.f32 %v2220_v54, %v2130_v41  ;;  %v1926_v25 = vpop.f32.mrf.mxu2 }
 0x2a2   : > { %v2464_v22 = vmul.f32 %v3226_v53, %v2432_v27  ;;  %v1975_v50 = vadd.f32 %v1926_v25, %v1841_v33 }
 0x2a3   : > { %v4662_v43 = vadd.f32 %v4659_v30, %v2270_v3 }
 0x2a4   : > { %v3228_v59 = vpop.eup %3227  ;;  %v2560_v49 = vadd.f32 2.0, %v2464_v22  ;;  %v2528_v13 = vmul.f32 %v2464_v22, %v4639_v18 }
 0x2a5   : > { %v2623_v42 = vmul.f32 %v3228_v59, %v2527_v39  ;;  %v2338_v14 = vmin.f32 %v4662_v43, 20.0  ;;  %v2222_v61 = vpop.f32.mrf.mxu0  ;;  %vm2498_vm12 = vcmp.gt.f32.partialorder %v4662_v43, 20.0 }
 0x2a6   : > { %3231 = vrcp.f32 %v2560_v49  ;;  %v2082_v17 = vpop.f32.mrf.mxu3  ;;  %v1797_v62 = vpop.f32.mrf.mxu1 }
 0x2a7   : > { %v3230_v15 = vpop.eup %3229  ;;  %v2655_v1 = vsel %vm2495_vm9, %v4630_v11, %v2623_v42  ;;  %v2390_v19 = vmul.f32 1.442695, %v2338_v14  ;;  %v2131_v4 = vadd.f32 %v2082_v17, %v1975_v50  ;;  %v1843_v40 = vadd.f32 %v1797_v62, %v4326_v0 }
 0x2a8   : > { %2687 = vst [vmem:[%s4433_s9 + $0x88] sm:$0xff] %v2655_v1  ;;  %v2433_v16 = vadd.f32 2.0, %v3230_v15 }
 0x2a9   : > { %3233 = vpow2.f32 %v2390_v19  ;;  %v2271_v24 = vadd.f32 %v2222_v61, %v2131_v4  ;;  %v1929_v57 = vpop.f32.mrf.mxu2 }
 0x2aa   : > { %v2465_v34 = vmul.f32 %v3230_v15, %v2433_v16  ;;  %v1976_v58 = vadd.f32 %v1929_v57, %v1842_v48 }
 0x2ab   : > { %v4671_v32 = vadd.f32 %v4659_v30, %v2271_v24 }
 0x2ac   : > { %v3232_v47 = vpop.eup %3231  ;;  %v2561_v46 = vadd.f32 2.0, %v2465_v34  ;;  %v2529_v7 = vmul.f32 %v2465_v34, %v4648_v26 }
 0x2ad   : > { %v2624_v11 = vmul.f32 %v3232_v47, %v2528_v13  ;;  %v2339_v38 = vmin.f32 %v4671_v32, 20.0  ;;  %v2225_v60 = vpop.f32.mrf.mxu0  ;;  %vm2499_vm13 = vcmp.gt.f32.partialorder %v4671_v32, 20.0 }
 0x2ae   : > { %3235 = vrcp.f32 %v2561_v46  ;;  %v2085_v21 = vpop.f32.mrf.mxu3  ;;  %v1800_v56 = vpop.f32.mrf.mxu1 }
 0x2af   : > { %v3234_v9 = vpop.eup %3233  ;;  %v2656_v6 = vsel %vm2496_vm10, %v4639_v18, %v2624_v11  ;;  %v2392_v36 = vmul.f32 1.442695, %v2339_v38  ;;  %v2132_v12 = vadd.f32 %v2085_v21, %v1976_v58  ;;  %v1844_v39 = vadd.f32 %v1800_v56, %v4335_v29 }
 0x2b0   : > { %2688 = vst [vmem:[%s4433_s9 + $0x90] sm:$0xff] %v2656_v6  ;;  %v2434_v37 = vadd.f32 2.0, %v3234_v9 }
 0x2b1   : > { %3237 = vpow2.f32 %v2392_v36  ;;  %v2272_v35 = vadd.f32 %v2225_v60, %v2132_v12  ;;  %v1931_v44 = vpop.f32.mrf.mxu2 }
 0x2b2   : > { %v2466_v10 = vmul.f32 %v3234_v9, %v2434_v37  ;;  %v1977_v54 = vadd.f32 %v1931_v44, %v1843_v40 }
 0x2b3   : > { %v4680_v55 = vadd.f32 %v4659_v30, %v2272_v35 }
 0x2b4   : > { %v3236_v28 = vpop.eup %3235  ;;  %v2562_v23 = vadd.f32 2.0, %v2466_v10  ;;  %v2530_v49 = vmul.f32 %v2466_v10, %v4662_v43 }
 0x2b5   : > { %v2625_v18 = vmul.f32 %v3236_v28, %v2529_v7  ;;  %v2340_v53 = vmin.f32 %v4680_v55, 20.0  ;;  %v2227_v45 = vpop.f32.mrf.mxu0  ;;  %vm2500_vm14 = vcmp.gt.f32.partialorder %v4680_v55, 20.0 }
 0x2b6   : > { %3239 = vrcp.f32 %v2562_v23  ;;  %v2087_v31 = vpop.f32.mrf.mxu3  ;;  %v1802_v0 = vpop.f32.mrf.mxu1 }
 0x2b7   : > { %v3238_v41 = vpop.eup %3237  ;;  %v2657_v27 = vsel %vm2497_vm11, %v4648_v26, %v2625_v18  ;;  %v2394_v3 = vmul.f32 1.442695, %v2340_v53  ;;  %v2133_v33 = vadd.f32 %v2087_v31, %v1977_v54  ;;  %v1845_v34 = vadd.f32 %v1802_v0, %v4340_v52 }
 0x2b8   : > { %2689 = vst [vmem:[%s4433_s9 + $0x98] sm:$0xff] %v2657_v27  ;;  %v2435_v25 = vadd.f32 2.0, %v3238_v41 }
 0x2b9   : > { %3241 = vpow2.f32 %v2394_v3  ;;  %v2273_v22 = vadd.f32 %v2227_v45, %v2133_v33  ;;  %v1934_v50 = vpop.f32.mrf.mxu2 }
 0x2ba   : > { %v2467_v59 = vmul.f32 %v3238_v41, %v2435_v25  ;;  %v1978_v14 = vadd.f32 %v1934_v50, %v1844_v39 }
 0x2bb   : > { %v4689_v42 = vadd.f32 %v4659_v30, %v2273_v22 }
 0x2bc   : > { %v3240_v61 = vpop.eup %3239  ;;  %v2563_v17 = vadd.f32 2.0, %v2467_v59  ;;  %v2531_v47 = vmul.f32 %v2467_v59, %v4671_v32 }
 0x2bd   : > { %v2626_v26 = vmul.f32 %v3240_v61, %v2530_v49  ;;  %v2341_v62 = vmin.f32 %v4689_v42, 20.0  ;;  %v2230_v15 = vpop.f32.mrf.mxu0  ;;  %vm2501_vm15 = vcmp.gt.f32.partialorder %v4689_v42, 20.0 }
 0x2be   : > { %3243 = vrcp.f32 %v2563_v17  ;;  %v2090_v1 = vpop.f32.mrf.mxu3  ;;  %v1805_v29 = vpop.f32.mrf.mxu1 }
 0x2bf   : > { %v3242_v19 = vpop.eup %3241  ;;  %v2658_v4 = vsel %vm2498_vm12, %v4662_v43, %v2626_v26  ;;  %v2396_v16 = vmul.f32 1.442695, %v2341_v62  ;;  %v2134_v24 = vadd.f32 %v2090_v1, %v1978_v14  ;;  %v1846_v44 = vadd.f32 %v1805_v29, %v4349_v20 }
 0x2c0   : > { %2690 = vst [vmem:[%s4433_s9 + $0xa0] sm:$0xff] %v2658_v4  ;;  %v2436_v48 = vadd.f32 2.0, %v3242_v19 }
 0x2c1   : > { %3245 = vpow2.f32 %v2396_v16  ;;  %v2274_v57 = vadd.f32 %v2230_v15, %v2134_v24  ;;  %v1936_v13 = vpop.f32.mrf.mxu2 }
 0x2c2   : > { %v2468_v58 = vmul.f32 %v3242_v19, %v2436_v48  ;;  %v1979_v11 = vadd.f32 %v1936_v13, %v1845_v34 }
 0x2c3   : > { %v4698_v46 = vadd.f32 %v4659_v30, %v2274_v57 }
 0x2c4   : > { %v3244_v38 = vpop.eup %3243  ;;  %v2564_v60 = vadd.f32 2.0, %v2468_v58  ;;  %v2532_v54 = vmul.f32 %v2468_v58, %v4680_v55 }
 0x2c5   : > { %v2627_v43 = vmul.f32 %v3244_v38, %v2531_v47  ;;  %v2342_v21 = vmin.f32 %v4698_v46, 20.0  ;;  %v2232_v56 = vpop.f32.mrf.mxu0  ;;  %vm2502_vm0 = vcmp.gt.f32.partialorder %v4698_v46, 20.0 }
 0x2c6   : > { %3247 = vrcp.f32 %v2564_v60  ;;  %v2092_v9 = vpop.f32.mrf.mxu3  ;;  %v1807_v52 = vpop.f32.mrf.mxu1 }
 0x2c7   : > { %v3246_v6 = vpop.eup %3245  ;;  %v2659_v36 = vsel %vm2499_vm13, %v4671_v32, %v2627_v43  ;;  %v2398_v12 = vmul.f32 1.442695, %v2342_v21  ;;  %v2135_v37 = vadd.f32 %v2092_v9, %v1979_v11  ;;  %v1847_v39 = vadd.f32 %v1807_v52, %v4354_v8 }
 0x2c8   : > { %2691 = vst [vmem:[%s4433_s9 + $0xa8] sm:$0xff] %v2659_v36  ;;  %v2437_v35 = vadd.f32 2.0, %v3246_v6 }
 0x2c9   : > { %3249 = vpow2.f32 %v2398_v12  ;;  %v2275_v40 = vadd.f32 %v2232_v56, %v2135_v37  ;;  %v1939_v10 = vpop.f32.mrf.mxu2 }
 0x2ca   : > { %v2469_v7 = vmul.f32 %v3246_v6, %v2437_v35  ;;  %v1980_v23 = vadd.f32 %v1939_v10, %v1846_v44 }
 0x2cb   : > { %v4707_v28 = vadd.f32 %v4659_v30, %v2275_v40 }
 0x2cc   : > { %v3248_v18 = vpop.eup %3247  ;;  %v2565_v53 = vadd.f32 2.0, %v2469_v7  ;;  %v2533_v49 = vmul.f32 %v2469_v7, %v4689_v42 }
 0x2cd   : > { %v2628_v32 = vmul.f32 %v3248_v18, %v2532_v54  ;;  %v2343_v45 = vmin.f32 %v4707_v28, 20.0  ;;  %v2235_v31 = vpop.f32.mrf.mxu0  ;;  %vm2503_vm1 = vcmp.gt.f32.partialorder %v4707_v28, 20.0 }
 0x2ce   : > { %3251 = vrcp.f32 %v2565_v53  ;;  %v2095_v0 = vpop.f32.mrf.mxu3  ;;  %v1810_v33 = vpop.f32.mrf.mxu1 }
 0x2cf   : > { %v3250_v20 = vpop.eup %3249  ;;  %v2660_v41 = vsel %vm2500_vm14, %v4680_v55, %v2628_v32  ;;  %v2400_v27 = vmul.f32 1.442695, %v2343_v45  ;;  %v2136_v3 = vadd.f32 %v2095_v0, %v1980_v23  ;;  %v1848_v48 = vadd.f32 %v1810_v33, %v4363_v51 }
 0x2d0   : > { %2692 = vst [vmem:[%s4433_s9 + $0xb0] sm:$0xff] %v2660_v41  ;;  %v2438_v25 = vadd.f32 2.0, %v3250_v20 }
 0x2d1   : > { %3253 = vpow2.f32 %v2400_v27  ;;  %v2276_v22 = vadd.f32 %v2235_v31, %v2136_v3  ;;  %v1941_v50 = vpop.f32.mrf.mxu2 }
 0x2d2   : > { %v2470_v59 = vmul.f32 %v3250_v20, %v2438_v25  ;;  %v1981_v61 = vadd.f32 %v1941_v50, %v1847_v39 }
 0x2d3   : > { %v4716_v14 = vadd.f32 %v4659_v30, %v2276_v22 }
 0x2d4   : > { %v3252_v17 = vpop.eup %3251  ;;  %v2566_v55 = vadd.f32 2.0, %v2470_v59  ;;  %v2534_v58 = vmul.f32 %v2470_v59, %v4698_v46 }
 0x2d5   : > { %v2629_v26 = vmul.f32 %v3252_v17, %v2533_v49  ;;  %v2344_v62 = vmin.f32 %v4716_v14, 20.0  ;;  %v2237_v15 = vpop.f32.mrf.mxu0  ;;  %vm2504_vm2 = vcmp.gt.f32.partialorder %v4716_v14, 20.0 }
 0x2d6   : > { %3255 = vrcp.f32 %v2566_v55  ;;  %v2097_v1 = vpop.f32.mrf.mxu3  ;;  %v1812_v34 = vpop.f32.mrf.mxu1 }
 0x2d7   : > { %v3254_v8 = vpop.eup %3253  ;;  %v2661_v29 = vsel %vm2501_vm15, %v4689_v42, %v2629_v26  ;;  %v2402_v19 = vmul.f32 1.442695, %v2344_v62  ;;  %v2137_v4 = vadd.f32 %v2097_v1, %v1981_v61  ;;  %v1849_v37 = vadd.f32 %v1812_v34, %v4368_v63 }
 0x2d8   : > { %2693 = vst [vmem:[%s4433_s9 + $0xb8] sm:$0xff] %v2661_v29  ;;  %v2439_v16 = vadd.f32 2.0, %v3254_v8 }
 0x2d9   : > { %3257 = vpow2.f32 %v2402_v19  ;;  %v2277_v24 = vadd.f32 %v2237_v15, %v2137_v4  ;;  %v1944_v57 = vpop.f32.mrf.mxu2 }
 0x2da   : > { %v2471_v13 = vmul.f32 %v3254_v8, %v2439_v16  ;;  %v1982_v11 = vadd.f32 %v1944_v57, %v1848_v48 }
 0x2db   : > { %v4725_v47 = vadd.f32 %v4659_v30, %v2277_v24 }
 0x2dc   : > { %v3256_v38 = vpop.eup %3255  ;;  %v2567_v42 = vadd.f32 2.0, %v2471_v13  ;;  %v2535_v44 = vmul.f32 %v2471_v13, %v4707_v28 }
 0x2dd   : > { %v2630_v60 = vmul.f32 %v3256_v38, %v2534_v58  ;;  %v2345_v43 = vmin.f32 %v4725_v47, 20.0  ;;  %v2240_v21 = vpop.f32.mrf.mxu0  ;;  %vm2505_vm3 = vcmp.gt.f32.partialorder %v4725_v47, 20.0 }
 0x2de   : > { %3259 = vrcp.f32 %v2567_v42  ;;  %v2100_v51 = vpop.f32.mrf.mxu3  ;;  %v1815_v54 = vpop.f32.mrf.mxu1 }
 0x2df   : > { %v3258_v56 = vpop.eup %3257  ;;  %v2662_v9 = vsel %vm2502_vm0, %v4698_v46, %v2630_v60  ;;  %v2404_v52 = vmul.f32 1.442695, %v2345_v43  ;;  %v2138_v6 = vadd.f32 %v2100_v51, %v1982_v11  ;;  %v1850_v3 = vadd.f32 %v1815_v54, %v4377_v2 }
 0x2e0   : > { %2694 = vst [vmem:[%s4433_s9 + $0xc0] sm:$0xff] %v2662_v9  ;;  %v2440_v36 = vadd.f32 2.0, %v3258_v56 }
 0x2e1   : > { %3261 = vpow2.f32 %v2404_v52  ;;  %v2278_v12 = vadd.f32 %v2240_v21, %v2138_v6  ;;  %v1946_v35 = vpop.f32.mrf.mxu2 }
 0x2e2   : > { %v2472_v40 = vmul.f32 %v3258_v56, %v2440_v36  ;;  %v1983_v7 = vadd.f32 %v1946_v35, %v1849_v37 }
 0x2e3   : > { %v4734_v10 = vadd.f32 %v4659_v30, %v2278_v12 }
 0x2e4   : > { %v3260_v23 = vpop.eup %3259  ;;  %v2568_v46 = vadd.f32 2.0, %v2472_v40  ;;  %v2536_v22 = vmul.f32 %v2472_v40, %v4716_v14 }
 0x2e5   : > { %v2631_v18 = vmul.f32 %v3260_v23, %v2535_v44  ;;  %v2346_v53 = vmin.f32 %v4734_v10, 20.0  ;;  %v2242_v32 = vpop.f32.mrf.mxu0  ;;  %vm2506_vm4 = vcmp.gt.f32.partialorder %v4734_v10, 20.0 }
 0x2e6   : > { %3263 = vrcp.f32 %v2568_v46  ;;  %v2102_v63 = vpop.f32.mrf.mxu3  ;;  %v1817_v17 = vpop.f32.mrf.mxu1 }
 0x2e7   : > { %v3262_v45 = vpop.eup %3261  ;;  %v2663_v31 = vsel %vm2503_vm1, %v4707_v28, %v2631_v18  ;;  %v2406_v0 = vmul.f32 1.442695, %v2346_v53  ;;  %v2139_v20 = vadd.f32 %v2102_v63, %v1983_v7  ;;  %v1851_v19 = vadd.f32 %v1817_v17, %v4382_v5 }
 0x2e8   : > { %2695 = vst [vmem:[%s4433_s9 + $0xc8] sm:$0xff] %v2663_v31  ;;  %v2441_v41 = vadd.f32 2.0, %v3262_v45 }
 0x2e9   : > { %3265 = vpow2.f32 %v2406_v0  ;;  %v2279_v27 = vadd.f32 %v2242_v32, %v2139_v20  ;;  %v1949_v33 = vpop.f32.mrf.mxu2 }
 0x2ea   : > { %v2473_v25 = vmul.f32 %v3262_v45, %v2441_v41  ;;  %v1984_v50 = vadd.f32 %v1949_v33, %v1850_v3 }
 0x2eb   : > { %v4743_v39 = vadd.f32 %v4659_v30, %v2279_v27 }
 0x2ec   : > { %v3264_v59 = vpop.eup %3263  ;;  %v2569_v49 = vadd.f32 2.0, %v2473_v25  ;;  %v2537_v24 = vmul.f32 %v2473_v25, %v4725_v47 }
 0x2ed   : > { %v2632_v28 = vmul.f32 %v3264_v59, %v2536_v22  ;;  %v2347_v61 = vmin.f32 %v4743_v39, 20.0  ;;  %v2245_v55 = vpop.f32.mrf.mxu0  ;;  %vm2507_vm5 = vcmp.gt.f32.partialorder %v4743_v39, 20.0 }
 0x2ee   : > { %3267 = vrcp.f32 %v2569_v49  ;;  %v2105_v2 = vpop.f32.mrf.mxu3 }
 0x2ef   : > { %v3266_v26 = vpop.eup %3265  ;;  %v2664_v62 = vsel %vm2504_vm2, %v4716_v14, %v2632_v28  ;;  %v2408_v15 = vmul.f32 1.442695, %v2347_v61  ;;  %v2140_v1 = vadd.f32 %v2105_v2, %v1984_v50 }
 0x2f0   : > { %2696 = vst [vmem:[%s4433_s9 + $0xd0] sm:$0xff] %v2664_v62  ;;  %v2442_v8 = vadd.f32 2.0, %v3266_v26 }
 0x2f1   : > { %3269 = vpow2.f32 %v2408_v15  ;;  %v2280_v29 = vadd.f32 %v2245_v55, %v2140_v1  ;;  %v1951_v4 = vpop.f32.mrf.mxu2 }
 0x2f2   : > { %v2474_v16 = vmul.f32 %v3266_v26, %v2442_v8  ;;  %v1985_v57 = vadd.f32 %v1951_v4, %v1851_v19 }
 0x2f3   : > { %v2316_v48 = vadd.f32 %v4659_v30, %v2280_v29 }
 0x2f4   : > { %v3268_v34 = vpop.eup %3267  ;;  %v2570_v13 = vadd.f32 2.0, %v2474_v16  ;;  %v2538_v9 = vmul.f32 %v2474_v16, %v4734_v10 }
 0x2f5   : > { %v2633_v58 = vmul.f32 %v3268_v34, %v2537_v24  ;;  %v2348_v14 = vmin.f32 %v2316_v48, 20.0  ;;  %v2247_v21 = vpop.f32.mrf.mxu0  ;;  %vm2508_vm6 = vcmp.gt.f32.partialorder %v2316_v48, 20.0 }
 0x2f6   : > { %3271 = vrcp.f32 %v2570_v13  ;;  %v2107_v11 = vpop.f32.mrf.mxu3 }
 0x2f7   : > { %v3270_v38 = vpop.eup %3269  ;;  %v2665_v42 = vsel %vm2505_vm3, %v4725_v47, %v2633_v58  ;;  %v2410_v5 = vmul.f32 1.442695, %v2348_v14  ;;  %v2141_v60 = vadd.f32 %v2107_v11, %v1985_v57 }
 0x2f8   : > { %2697 = vst [vmem:[%s4433_s9 + $0xd8] sm:$0xff] %v2665_v42  ;;  %v2443_v43 = vadd.f32 2.0, %v3270_v38 }
 0x2f9   : > { %3273 = vpow2.f32 %v2410_v5  ;;  %v2281_v51 = vadd.f32 %v2247_v21, %v2141_v60 }
 0x2fa   : > { %v2475_v56 = vmul.f32 %v3270_v38, %v2443_v43 }
 0x2fb   : > { %v2317_v52 = vadd.f32 %v4659_v30, %v2281_v51 }
 0x2fc   : > { %v3272_v6 = vpop.eup %3271  ;;  %v2571_v36 = vadd.f32 2.0, %v2475_v56  ;;  %v2539_v54 = vmul.f32 %v2475_v56, %v4743_v39 }
 0x2fd   : > { %v2634_v12 = vmul.f32 %v3272_v6, %v2538_v9  ;;  %v2349_v37 = vmin.f32 %v2317_v52, 20.0  ;;  %vm2509_vm7 = vcmp.gt.f32.partialorder %v2317_v52, 20.0 }
 0x2fe   : > { %3275 = vrcp.f32 %v2571_v36 }
 0x2ff   : > { %v3274_v47 = vpop.eup %3273  ;;  %v2666_v35 = vsel %vm2506_vm4, %v4734_v10, %v2634_v12  ;;  %v2412_v40 = vmul.f32 1.442695, %v2349_v37 }
 0x300   : > { %2698 = vst [vmem:[%s4433_s9 + $0xe0] sm:$0xff] %v2666_v35  ;;  %v2444_v44 = vadd.f32 2.0, %v3274_v47 }
 0x301   : > { %3277 = vpow2.f32 %v2412_v40 }
 0x302   : > { %v2476_v7 = vmul.f32 %v3274_v47, %v2444_v44 }
 0x304   : > { %v3276_v30 = vpop.eup %3275  ;;  %v2572_v23 = vadd.f32 2.0, %v2476_v7  ;;  %v2540_v63 = vmul.f32 %v2476_v7, %v2316_v48 }
 0x305   : > { %v2635_v46 = vmul.f32 %v3276_v30, %v2539_v54 }
 0x306   : > { %3279 = vrcp.f32 %v2572_v23 }
 0x307   : > { %v3278_v18 = vpop.eup %3277  ;;  %v2667_v53 = vsel %vm2507_vm5, %v4743_v39, %v2635_v46 }
 0x308   : > { %2699 = vst [vmem:[%s4433_s9 + $0xe8] sm:$0xff] %v2667_v53  ;;  %v2445_v10 = vadd.f32 2.0, %v3278_v18 }
 0x30a   : > { %v2477_v32 = vmul.f32 %v3278_v18, %v2445_v10 }
 0x30c   : > { %v3280_v45 = vpop.eup %3279  ;;  %v2573_v31 = vadd.f32 2.0, %v2477_v32  ;;  %v2541_v41 = vmul.f32 %v2477_v32, %v2317_v52 }
 0x30d   : > { %v2636_v0 = vmul.f32 %v3280_v45, %v2540_v63 }
 0x30e   : > { %3281 = vrcp.f32 %v2573_v31 }
 0x30f   : > { %v2668_v20 = vsel %vm2508_vm6, %v2316_v48, %v2636_v0 }
 0x310   : > { %2700 = vst [vmem:[%s4433_s9 + $0xf0] sm:$0xff] %v2668_v20 }
 0x314   : > { %v3282_v27 = vpop.eup %3281 }
 0x315   : > { %v2637_v3 = vmul.f32 %v3282_v27, %v2541_v41 }
 0x317   : > { %v2669_v33 = vsel %vm2509_vm7, %v2317_v52, %v2637_v3 }
 0x318   : > { %2701 = vst [vmem:[%s4433_s9 + $0xf8] sm:$0xff] %v2669_v33 }
 0x319   : > { %3319 = shalt.err (!%p3316_p5)
}
 0x31a   : > { %s3372_s7 = smov 128   ;;  %s3373_s9 = smov 8  }
 0x31b   : > { %3097 = dma.vmem_to_hbm [thread:$0]  (%p3434_p4), %s2717_s26, 4096, %s2719_s27, %s2703_s15, %s3372_s7, %s3372_s7, %s3373_s9  }
 0x31c PF: > { %p3103_p6 = scmp.ge.s32.totalorder %s3370_s17, 2  ;;  %s2733_s10 = sand.u32 1, %s3350_s12  }
 0x31d   : > { %s2734_s11 = scalar_lea.sflag [#allocation3], %s2733_s10 }
 0x31e   : > { %p3100_p7 = pnand %p3103_p6, %p3441_p8 }
 0x320   : > { %p3101_p9 = pneg %p3100_p7 }
 0x322   : > { %3345 = dma.done.wait (%p3101_p9), %s2734_s11, 4096  }
 0x323   : > { %3347 = vsyncadd (%p3101_p9), %s2734_s11, 4294963200  ;;  %s16_s17 = sadd.s32 1, %s3370_s17   ;;  %s4949_s12 = smov %s3354_s13 }
 0x324   : > { %p13_p10 = scmp.ge.s32.totalorder %s16_s17, 4   ;;  %s4950_s13 = smov %s3358_s14 }
 0x325   : > { %s4951_s14 = smov %s3447_s25  ;;  %s4952_s15 = smov %s3366_s16 }
 0x326   : > { %s4953_s16 = smov %s4955_s20  ;;  %15 = sbr.rel (!%p13_p10) target bundleno = 4 (0x4), region = 81 }
 0x32b   :  { %2740 = vsyncpa [#allocation3], 1 }
 0x32c   :  { %2742 = vsyncpa [#allocation3 + $0x1], 1 }

</bundles_post_ra>
